<compile_context>
chip_gen: v7x
topology: tpu7x:2x2x1
jax: 0.10.0
libtpu: 0.0.40
codegen_flags: <defaults>
</compile_context>

<pallas_src>
import jax
import jax.numpy as jnp
import numpy as np
from jax.experimental import pallas as pl
from jax.experimental.pallas import tpu as pltpu

_HP = 32          # padded H frame per image (28 + 2*2)
_WP = 32          # padded W per image
_LANES = 128      # lane-dense output width


# ---------------------------------------------------------------------------
# The single fused Pallas kernel (one batch block per grid step)
# ---------------------------------------------------------------------------
def _lenet5_kernel(x_ref, t1_ref, b1_ref, t3_ref, b3_ref, t5_ref, b5_ref,
                   w6_ref, b6_ref, wo_ref, bo_ref, out_ref):
    """c1 -> s2 -> c3 -> s4 -> c5 -> flatten -> f6 -> output, VMEM-resident.

    x_ref : (nb*32, 32) zero-padded input block, rows = (b, h) frame, lanes = w.
    t1/t3/t5 : (5, K, N) bf16 banded conv weights (one bank per kernel row dy).
    out_ref : (nb, 128) lane-dense logits (cols >= num_classes are zero).
    Garbage frame rows never feed valid rows (receptive field 31 < 32).
    """
    f32 = jnp.float32
    bf16 = jnp.bfloat16
    R0 = x_ref.shape[0]            # nb * 32
    nb = out_ref.shape[0]

    x16 = x_ref[...].astype(bf16)                            # (nb*32, 32)

    # ---- c1: 5x5 conv, padding=2 (W folded into banded T1, H via row shifts) ----
    L1 = R0 - 4
    acc = jnp.dot(x16[0:L1, :], t1_ref[0], preferred_element_type=f32)
    for dy in range(1, 5):
        acc = acc + jnp.dot(x16[dy:dy + L1, :], t1_ref[dy],
                            preferred_element_type=f32)
    a = jnp.maximum(acc + b1_ref[...], 0.0)                  # (L1, 256) f32

    # ---- s2: 2x2 max pool (ReLU/pool commute) ----
    a = jnp.maximum(a[:, 0:128], a[:, 128:256])              # W-pool: even|odd lane tiles
    a = jnp.maximum(a[0:L1 - 1, :], a[1:L1, :])              # H-pool: rows (2i, 2i+1)
    L2 = L1 - 1
    a16 = a.astype(bf16)                                     # (L2, 128)

    # ---- c3: 5x5 conv (H-dilated by 2 inside the frame) ----
    L3 = L2 - 8
    acc = jnp.dot(a16[0:L3, :], t3_ref[0], preferred_element_type=f32)
    for dy in range(1, 5):
        acc = acc + jnp.dot(a16[2 * dy:2 * dy + L3, :], t3_ref[dy],
                            preferred_element_type=f32)
    a = jnp.maximum(acc + b3_ref[...], 0.0)                  # (L3, 256) f32

    # ---- s4: 2x2 max pool ----
    a = jnp.maximum(a[:, 0:128], a[:, 128:256])              # W-pool
    a = jnp.maximum(a[0:L3 - 2, :], a[2:L3, :])              # H-pool (row stride 2)
    L4 = L3 - 2
    a16 = a.astype(bf16)                                     # (L4, 128)

    # ---- c5: 5x5 conv -> 1x1 spatial, 120 channels (H-dilated by 4) ----
    L5 = L4 - 16
    acc = jnp.dot(a16[0:L5, :], t5_ref[0], preferred_element_type=f32)
    for dy in range(1, 5):
        acc = acc + jnp.dot(a16[4 * dy:4 * dy + L5, :], t5_ref[dy],
                            preferred_element_type=f32)
    a = jnp.maximum(acc + b5_ref[...], 0.0)                  # (L5, 128) f32; row b*32 valid

    # ---- flatten: gather rows b*32 with ONE one-hot selection matmul ----
    rows = jax.lax.broadcasted_iota(jnp.int32, (nb, L5), 0)
    cols = jax.lax.broadcasted_iota(jnp.int32, (nb, L5), 1)
    sel = (cols == rows * _HP).astype(f32)                   # (nb, L5) one-hot
    feats = jnp.dot(sel, a, preferred_element_type=f32)      # (nb, 128)

    # ---- f6 + ReLU (dropout=0 -> Identity) ----
    h = jnp.maximum(
        jnp.dot(feats.astype(bf16), w6_ref[...], preferred_element_type=f32)
        + b6_ref[...], 0.0)                                  # (nb, 128)

    # ---- output: lane-dense 128-wide store (wrapper slices to num_classes) ----
    out_ref[...] = (jnp.dot(h.astype(bf16), wo_ref[...],
                            preferred_element_type=f32)
                    + bo_ref[...]).astype(out_ref.dtype)


# ---------------------------------------------------------------------------
# One-time weight preparation (outside the jitted path):
# fold the W-direction of each 5x5 conv and the pool's even/odd pairing into
# banded, lane-dense weight matrices; zero-pad FC weights; store MXU operands
# in bf16, all biases in f32.
# ---------------------------------------------------------------------------
def prepare_params(params):
    w1 = np.asarray(params["w1"], np.float32); b1 = np.asarray(params["b1"], np.float32)
    w3 = np.asarray(params["w3"], np.float32); b3 = np.asarray(params["b3"], np.float32)
    w5 = np.asarray(params["w5"], np.float32); b5 = np.asarray(params["b5"], np.float32)
    w6 = np.asarray(params["w6"], np.float32); b6 = np.asarray(params["b6"], np.float32)
    wo = np.asarray(params["wout"], np.float32); bo = np.asarray(params["bout"], np.float32)

    C1, C3, C5 = w1.shape[0], w3.shape[0], w5.shape[0]
    F6 = w6.shape[0]
    NC = wo.shape[0]
    assert C1 <= 8 and C3 <= 16 and C5 <= 128 and F6 <= 128 and NC <= 128, \
        "lane packing in this kernel assumes the default LeNet5 kernel_nums"
    assert w1.shape[2:] == (5, 5) and w3.shape[2:] == (5, 5) and w5.shape[2:] == (5, 5), \
        "banded weight construction assumes 5x5 kernels"

    # c1: input lanes = w (32); output lanes = parity(j)*128 + (j//2)*8 + co
    T1 = np.zeros((5, _WP, 256), np.float32)
    B1 = np.zeros((1, 256), np.float32)
    for j in range(28):
        cb = (j % 2) * 128 + (j // 2) * 8
        B1[0, cb:cb + C1] = b1
        for dy in range(5):
            T1[dy, j:j + 5, cb:cb + C1] = w1[:, 0, dy, :].T          # (dx, co)

    # c3: input lanes = q*8 + ci ; output lanes = parity(v)*128 + (v//2)*16 + co
    T3 = np.zeros((5, 128, 256), np.float32)
    B3 = np.zeros((1, 256), np.float32)
    for j3 in range(10):
        cb = (j3 % 2) * 128 + (j3 // 2) * 16
        B3[0, cb:cb + C3] = b3
        for dy in range(5):
            for dx in range(5):
                rb = (j3 + dx) * 8
                T3[dy, rb:rb + C1, cb:cb + C3] = w3[:, :, dy, dx].T  # (ci, co)

    # c5: input lanes = dx*16 + ci ; output lanes = co5 (0..119)
    T5 = np.zeros((5, 128, 128), np.float32)
    for dy in range(5):
        for j4 in range(5):
            T5[dy, j4 * 16:j4 * 16 + C3, :C5] = w5[:, :, dy, j4].T   # (ci, co)
    B5 = np.zeros((1, 128), np.float32)
    B5[0, :C5] = b5

    # FC weights: pre-transposed and zero-padded to lane-dense 128x128 tiles.
    W6p = np.zeros((128, 128), np.float32); W6p[:C5, :F6] = w6.T
    B6p = np.zeros((1, 128), np.float32);   B6p[0, :F6] = b6
    WOp = np.zeros((128, 128), np.float32); WOp[:F6, :NC] = wo.T
    BOp = np.zeros((1, 128), np.float32);   BOp[0, :NC] = bo

    bf = jnp.bfloat16
    tensors = (jnp.asarray(T1, dtype=bf), jnp.asarray(B1),
               jnp.asarray(T3, dtype=bf), jnp.asarray(B3),
               jnp.asarray(T5, dtype=bf), jnp.asarray(B5),
               jnp.asarray(W6p, dtype=bf), jnp.asarray(B6p),
               jnp.asarray(WOp, dtype=bf), jnp.asarray(BOp))
    return {"tensors": tensors, "num_classes": NC}


# ---------------------------------------------------------------------------
# Forward wrapper: layout plumbing + one batch-blocked pallas_call
# ---------------------------------------------------------------------------
def lenet5_forward(img, prep, *, block_batch=32):
    tensors = prep["tensors"]
    nc = prep["num_classes"]
    B, C, H, W = img.shape
    assert (C, H, W) == (1, 28, 28), \
        "fused kernel assumes classic MNIST LeNet-5 geometry (1x28x28 -> c5 1x1)"

    # Batch blocking: small batches run as a single block; large batches use a
    # parallel grid (megacore on v7x, input-DMA pipelining everywhere).
    if B <= block_batch:
        nb, Bp = B, B
    else:
        nb = block_batch if block_batch % 8 == 0 else ((block_batch + 7) // 8) * 8
        Bp = ((B + nb - 1) // nb) * nb
    grid = (Bp // nb,)

    # NCHW (B,1,28,28) -> zero-padded H/W frames (Bp*32, 32): rows=(b,h), lanes=w
    x = img.reshape(B, 28, 28).astype(jnp.float32)
    x = jnp.pad(x, ((0, Bp - B), (2, 2), (2, 2)))
    x0 = x.reshape(Bp * _HP, _WP)

    # Weights: full-array blocks with constant index_map -> stay VMEM-resident.
    w_specs = [pl.BlockSpec(t.shape, lambda i, n=t.ndim: (0,) * n) for t in tensors]
    in_specs = [pl.BlockSpec((nb * _HP, _WP), lambda i: (i, 0))] + w_specs
    out_specs = pl.BlockSpec((nb, _LANES), lambda i: (i, 0))

    bytes_w = sum(int(np.prod(t.shape)) * t.dtype.itemsize for t in tensors)
    cost = pl.CostEstimate(
        flops=int(2 * Bp * _HP * (5 * (_WP * 256 + 128 * 256 + 128 * 128)
                                  + 2 * 128 * 128)),
        transcendentals=0,
        bytes_accessed=int(Bp * _HP * _WP * 4 + bytes_w * grid[0] + Bp * _LANES * 4),
    )

    out = pl.pallas_call(
        _lenet5_kernel,
        out_shape=jax.ShapeDtypeStruct((Bp, _LANES), jnp.float32),
        grid=grid,
        in_specs=in_specs,
        out_specs=out_specs,
        compiler_params=pltpu.CompilerParams(
            dimension_semantics=("parallel",),
            vmem_limit_bytes=32 * 1024 * 1024),
        cost_estimate=cost,
    )(x0, *tensors)

    return out[:B, :nc]


# ---------------------------------------------------------------------------
# Deterministic parameter init (PyTorch-style uniform(+-1/sqrt(fan_in)))
# ---------------------------------------------------------------------------
def init_params(key, kernel_nums=(6, 16, 120), num_classes=10):
    ks = jax.random.split(key, 10)

    def uinit(k, shape, fan_in):
        bound = 1.0 / float(fan_in) ** 0.5
        return jax.random.uniform(k, shape, jnp.float32, -bound, bound)

    c1, c3, c5 = kernel_nums
    return dict(
        w1=uinit(ks[0], (c1, 1, 5, 5), 1 * 25),   b1=uinit(ks[1], (c1,), 1 * 25),
        w3=uinit(ks[2], (c3, c1, 5, 5), c1 * 25), b3=uinit(ks[3], (c3,), c1 * 25),
        w5=uinit(ks[4], (c5, c3, 5, 5), c3 * 25), b5=uinit(ks[5], (c5,), c3 * 25),
        w6=uinit(ks[6], (84, c5), c5),            b6=uinit(ks[7], (84,), c5),
        wout=uinit(ks[8], (num_classes, 84), 84), bout=uinit(ks[9], (num_classes,), 84),
    )


# ---------------------------------------------------------------------------
# Pure-JAX f32 reference (NCHW, mirrors the PyTorch module) for verification
# ---------------------------------------------------------------------------
def reference_forward(img, params):
    def conv(x, w, b, padding):
        y = jax.lax.conv_general_dilated(
            x, w, window_strides=(1, 1),
            padding=[(padding, padding), (padding, padding)],
            dimension_numbers=("NCHW", "OIHW", "NCHW"))
        return y + b[None, :, None, None]

    def relu(x):
        return jnp.maximum(x, 0.0)

    def pool(x):
        return jax.lax.reduce_window(x, -jnp.inf, jax.lax.max,
                                     (1, 1, 2, 2), (1, 1, 2, 2), "VALID")

    x = pool(relu(conv(img, params["w1"], params["b1"], 2)))
    x = pool(relu(conv(x, params["w3"], params["b3"], 0)))
    x = relu(conv(x, params["w5"], params["b5"], 0))
    x = x.reshape(x.shape[0], -1)
    x = relu(x @ params["w6"].T + params["b6"])
    x = x @ params["wout"].T + params["bout"]
    return x


if __name__ == "__main__":
    key = jax.random.PRNGKey(0)
    kp, kx = jax.random.split(key)
    params = init_params(kp)
    prep = prepare_params(params)          # one-time, outside the jitted path

    img = jax.random.normal(kx, (2, 1, 28, 28), jnp.float32)  # NCHW, batch=2

    fwd = jax.jit(lambda x: lenet5_forward(x, prep))
    out = jax.block_until_ready(fwd(img))
    assert out.shape == (2, 10)

    # bf16 MXU operands (f32 accumulation) -> loosened tolerance vs f32 reference.
    ref = reference_forward(img, params)
    np.testing.assert_allclose(np.asarray(out), np.asarray(ref),
                               rtol=5e-2, atol=5e-2)
    print("KERNEL_OK")
</pallas_src>

<mosaic_0001>
module attributes {stable_mosaic.version = 11 : i64} {
  func.func @_lenet5_kernel(%arg0: i32, %arg1: memref<64x32xf32, #tpu.memory_space<vmem>>, %arg2: memref<5x32x256xbf16, #tpu.memory_space<vmem>>, %arg3: memref<1x256xf32, #tpu.memory_space<vmem>>, %arg4: memref<5x128x256xbf16, #tpu.memory_space<vmem>>, %arg5: memref<1x256xf32, #tpu.memory_space<vmem>>, %arg6: memref<5x128x128xbf16, #tpu.memory_space<vmem>>, %arg7: memref<1x128xf32, #tpu.memory_space<vmem>>, %arg8: memref<128x128xbf16, #tpu.memory_space<vmem>>, %arg9: memref<1x128xf32, #tpu.memory_space<vmem>>, %arg10: memref<128x128xbf16, #tpu.memory_space<vmem>>, %arg11: memref<1x128xf32, #tpu.memory_space<vmem>>, %arg12: memref<2x128xf32, #tpu.memory_space<vmem>>) attributes {dimension_semantics = [#tpu.dimension_semantics<parallel>], iteration_bounds = array<i64: 1>, scalar_prefetch = 0 : i64, scratch_operands = 0 : i64, tpu.core_type = #tpu.core_type<tc>, window_params = [{transform_indices = @transform_0, window_bounds = array<i64: 64, 32>}, {pipeline_mode = #tpu.pipeline_mode<synchronous>, transform_indices = @transform_1, window_bounds = array<i64: 5, 32, 256>}, {pipeline_mode = #tpu.pipeline_mode<synchronous>, transform_indices = @transform_2, window_bounds = array<i64: 1, 256>}, {pipeline_mode = #tpu.pipeline_mode<synchronous>, transform_indices = @transform_3, window_bounds = array<i64: 5, 128, 256>}, {pipeline_mode = #tpu.pipeline_mode<synchronous>, transform_indices = @transform_4, window_bounds = array<i64: 1, 256>}, {pipeline_mode = #tpu.pipeline_mode<synchronous>, transform_indices = @transform_5, window_bounds = array<i64: 5, 128, 128>}, {pipeline_mode = #tpu.pipeline_mode<synchronous>, transform_indices = @transform_6, window_bounds = array<i64: 1, 128>}, {pipeline_mode = #tpu.pipeline_mode<synchronous>, transform_indices = @transform_7, window_bounds = array<i64: 128, 128>}, {pipeline_mode = #tpu.pipeline_mode<synchronous>, transform_indices = @transform_8, window_bounds = array<i64: 1, 128>}, {pipeline_mode = #tpu.pipeline_mode<synchronous>, transform_indices = @transform_9, window_bounds = array<i64: 128, 128>}, {pipeline_mode = #tpu.pipeline_mode<synchronous>, transform_indices = @transform_10, window_bounds = array<i64: 1, 128>}, {transform_indices = @transform_11, window_bounds = array<i64: 2, 128>}]} {
    %c0 = arith.constant 0 : index
    %c0_0 = arith.constant 0 : index
    %0 = vector.load %arg1[%c0, %c0_0] : memref<64x32xf32, #tpu.memory_space<vmem>>, vector<64x32xf32>
    %1 = arith.truncf %0 : vector<64x32xf32> to vector<64x32xbf16>
    %2 = vector.extract_strided_slice %1 {offsets = [0, 0], sizes = [60, 32], strides = [1, 1]} : vector<64x32xbf16> to vector<60x32xbf16>
    %c0_1 = arith.constant 0 : index
    %c0_2 = arith.constant 0 : index
    %c0_3 = arith.constant 0 : index
    %3 = vector.load %arg2[%c0_1, %c0_2, %c0_3] : memref<5x32x256xbf16, #tpu.memory_space<vmem>>, vector<1x32x256xbf16>
    %4 = vector.shape_cast %3 : vector<1x32x256xbf16> to vector<32x256xbf16>
    %cst = arith.constant dense<0.000000e+00> : vector<60x256xf32>
    %5 = tpu.matmul %2, %4, %cst {dimension_numbers = #tpu.dot_dimension_numbers<[1], [0], [0], [1], [0, 0, 1, 1], [], []>} : vector<60x32xbf16>, vector<32x256xbf16>, vector<60x256xf32> -> vector<60x256xf32>
    %6 = vector.extract_strided_slice %1 {offsets = [1, 0], sizes = [60, 32], strides = [1, 1]} : vector<64x32xbf16> to vector<60x32xbf16>
    %c1 = arith.constant 1 : index
    %c0_4 = arith.constant 0 : index
    %c0_5 = arith.constant 0 : index
    %7 = vector.load %arg2[%c1, %c0_4, %c0_5] : memref<5x32x256xbf16, #tpu.memory_space<vmem>>, vector<1x32x256xbf16>
    %8 = vector.shape_cast %7 : vector<1x32x256xbf16> to vector<32x256xbf16>
    %cst_6 = arith.constant dense<0.000000e+00> : vector<60x256xf32>
    %9 = tpu.matmul %6, %8, %cst_6 {dimension_numbers = #tpu.dot_dimension_numbers<[1], [0], [0], [1], [0, 0, 1, 1], [], []>} : vector<60x32xbf16>, vector<32x256xbf16>, vector<60x256xf32> -> vector<60x256xf32>
    %10 = arith.addf %5, %9 : vector<60x256xf32>
    %11 = vector.extract_strided_slice %1 {offsets = [2, 0], sizes = [60, 32], strides = [1, 1]} : vector<64x32xbf16> to vector<60x32xbf16>
    %c2 = arith.constant 2 : index
    %c0_7 = arith.constant 0 : index
    %c0_8 = arith.constant 0 : index
    %12 = vector.load %arg2[%c2, %c0_7, %c0_8] : memref<5x32x256xbf16, #tpu.memory_space<vmem>>, vector<1x32x256xbf16>
    %13 = vector.shape_cast %12 : vector<1x32x256xbf16> to vector<32x256xbf16>
    %cst_9 = arith.constant dense<0.000000e+00> : vector<60x256xf32>
    %14 = tpu.matmul %11, %13, %cst_9 {dimension_numbers = #tpu.dot_dimension_numbers<[1], [0], [0], [1], [0, 0, 1, 1], [], []>} : vector<60x32xbf16>, vector<32x256xbf16>, vector<60x256xf32> -> vector<60x256xf32>
    %15 = arith.addf %10, %14 : vector<60x256xf32>
    %16 = vector.extract_strided_slice %1 {offsets = [3, 0], sizes = [60, 32], strides = [1, 1]} : vector<64x32xbf16> to vector<60x32xbf16>
    %c3 = arith.constant 3 : index
    %c0_10 = arith.constant 0 : index
    %c0_11 = arith.constant 0 : index
    %17 = vector.load %arg2[%c3, %c0_10, %c0_11] : memref<5x32x256xbf16, #tpu.memory_space<vmem>>, vector<1x32x256xbf16>
    %18 = vector.shape_cast %17 : vector<1x32x256xbf16> to vector<32x256xbf16>
    %cst_12 = arith.constant dense<0.000000e+00> : vector<60x256xf32>
    %19 = tpu.matmul %16, %18, %cst_12 {dimension_numbers = #tpu.dot_dimension_numbers<[1], [0], [0], [1], [0, 0, 1, 1], [], []>} : vector<60x32xbf16>, vector<32x256xbf16>, vector<60x256xf32> -> vector<60x256xf32>
    %20 = arith.addf %15, %19 : vector<60x256xf32>
    %21 = vector.extract_strided_slice %1 {offsets = [4, 0], sizes = [60, 32], strides = [1, 1]} : vector<64x32xbf16> to vector<60x32xbf16>
    %c4 = arith.constant 4 : index
    %c0_13 = arith.constant 0 : index
    %c0_14 = arith.constant 0 : index
    %22 = vector.load %arg2[%c4, %c0_13, %c0_14] : memref<5x32x256xbf16, #tpu.memory_space<vmem>>, vector<1x32x256xbf16>
    %23 = vector.shape_cast %22 : vector<1x32x256xbf16> to vector<32x256xbf16>
    %cst_15 = arith.constant dense<0.000000e+00> : vector<60x256xf32>
    %24 = tpu.matmul %21, %23, %cst_15 {dimension_numbers = #tpu.dot_dimension_numbers<[1], [0], [0], [1], [0, 0, 1, 1], [], []>} : vector<60x32xbf16>, vector<32x256xbf16>, vector<60x256xf32> -> vector<60x256xf32>
    %25 = arith.addf %20, %24 : vector<60x256xf32>
    %c0_16 = arith.constant 0 : index
    %c0_17 = arith.constant 0 : index
    %26 = vector.load %arg3[%c0_16, %c0_17] : memref<1x256xf32, #tpu.memory_space<vmem>>, vector<1x256xf32>
    %27 = vector.broadcast %26 : vector<1x256xf32> to vector<60x256xf32>
    %28 = arith.addf %25, %27 : vector<60x256xf32>
    %cst_18 = arith.constant 0.000000e+00 : f32
    %29 = vector.broadcast %cst_18 : f32 to vector<60x256xf32>
    %30 = arith.maximumf %28, %29 : vector<60x256xf32>
    %31 = vector.extract_strided_slice %30 {offsets = [0, 0], sizes = [60, 128], strides = [1, 1]} : vector<60x256xf32> to vector<60x128xf32>
    %32 = vector.extract_strided_slice %30 {offsets = [0, 128], sizes = [60, 128], strides = [1, 1]} : vector<60x256xf32> to vector<60x128xf32>
    %33 = arith.maximumf %31, %32 : vector<60x128xf32>
    %34 = vector.extract_strided_slice %33 {offsets = [0, 0], sizes = [59, 128], strides = [1, 1]} : vector<60x128xf32> to vector<59x128xf32>
    %35 = vector.extract_strided_slice %33 {offsets = [1, 0], sizes = [59, 128], strides = [1, 1]} : vector<60x128xf32> to vector<59x128xf32>
    %36 = arith.maximumf %34, %35 : vector<59x128xf32>
    %37 = arith.truncf %36 : vector<59x128xf32> to vector<59x128xbf16>
    %38 = vector.extract_strided_slice %37 {offsets = [0, 0], sizes = [51, 128], strides = [1, 1]} : vector<59x128xbf16> to vector<51x128xbf16>
    %c0_19 = arith.constant 0 : index
    %c0_20 = arith.constant 0 : index
    %c0_21 = arith.constant 0 : index
    %39 = vector.load %arg4[%c0_19, %c0_20, %c0_21] : memref<5x128x256xbf16, #tpu.memory_space<vmem>>, vector<1x128x256xbf16>
    %40 = vector.shape_cast %39 : vector<1x128x256xbf16> to vector<128x256xbf16>
    %cst_22 = arith.constant dense<0.000000e+00> : vector<51x256xf32>
    %41 = tpu.matmul %38, %40, %cst_22 {dimension_numbers = #tpu.dot_dimension_numbers<[1], [0], [0], [1], [0, 0, 1, 1], [], []>} : vector<51x128xbf16>, vector<128x256xbf16>, vector<51x256xf32> -> vector<51x256xf32>
    %42 = vector.extract_strided_slice %37 {offsets = [2, 0], sizes = [51, 128], strides = [1, 1]} : vector<59x128xbf16> to vector<51x128xbf16>
    %c1_23 = arith.constant 1 : index
    %c0_24 = arith.constant 0 : index
    %c0_25 = arith.constant 0 : index
    %43 = vector.load %arg4[%c1_23, %c0_24, %c0_25] : memref<5x128x256xbf16, #tpu.memory_space<vmem>>, vector<1x128x256xbf16>
    %44 = vector.shape_cast %43 : vector<1x128x256xbf16> to vector<128x256xbf16>
    %cst_26 = arith.constant dense<0.000000e+00> : vector<51x256xf32>
    %45 = tpu.matmul %42, %44, %cst_26 {dimension_numbers = #tpu.dot_dimension_numbers<[1], [0], [0], [1], [0, 0, 1, 1], [], []>} : vector<51x128xbf16>, vector<128x256xbf16>, vector<51x256xf32> -> vector<51x256xf32>
    %46 = arith.addf %41, %45 : vector<51x256xf32>
    %47 = vector.extract_strided_slice %37 {offsets = [4, 0], sizes = [51, 128], strides = [1, 1]} : vector<59x128xbf16> to vector<51x128xbf16>
    %c2_27 = arith.constant 2 : index
    %c0_28 = arith.constant 0 : index
    %c0_29 = arith.constant 0 : index
    %48 = vector.load %arg4[%c2_27, %c0_28, %c0_29] : memref<5x128x256xbf16, #tpu.memory_space<vmem>>, vector<1x128x256xbf16>
    %49 = vector.shape_cast %48 : vector<1x128x256xbf16> to vector<128x256xbf16>
    %cst_30 = arith.constant dense<0.000000e+00> : vector<51x256xf32>
    %50 = tpu.matmul %47, %49, %cst_30 {dimension_numbers = #tpu.dot_dimension_numbers<[1], [0], [0], [1], [0, 0, 1, 1], [], []>} : vector<51x128xbf16>, vector<128x256xbf16>, vector<51x256xf32> -> vector<51x256xf32>
    %51 = arith.addf %46, %50 : vector<51x256xf32>
    %52 = vector.extract_strided_slice %37 {offsets = [6, 0], sizes = [51, 128], strides = [1, 1]} : vector<59x128xbf16> to vector<51x128xbf16>
    %c3_31 = arith.constant 3 : index
    %c0_32 = arith.constant 0 : index
    %c0_33 = arith.constant 0 : index
    %53 = vector.load %arg4[%c3_31, %c0_32, %c0_33] : memref<5x128x256xbf16, #tpu.memory_space<vmem>>, vector<1x128x256xbf16>
    %54 = vector.shape_cast %53 : vector<1x128x256xbf16> to vector<128x256xbf16>
    %cst_34 = arith.constant dense<0.000000e+00> : vector<51x256xf32>
    %55 = tpu.matmul %52, %54, %cst_34 {dimension_numbers = #tpu.dot_dimension_numbers<[1], [0], [0], [1], [0, 0, 1, 1], [], []>} : vector<51x128xbf16>, vector<128x256xbf16>, vector<51x256xf32> -> vector<51x256xf32>
    %56 = arith.addf %51, %55 : vector<51x256xf32>
    %57 = vector.extract_strided_slice %37 {offsets = [8, 0], sizes = [51, 128], strides = [1, 1]} : vector<59x128xbf16> to vector<51x128xbf16>
    %c4_35 = arith.constant 4 : index
    %c0_36 = arith.constant 0 : index
    %c0_37 = arith.constant 0 : index
    %58 = vector.load %arg4[%c4_35, %c0_36, %c0_37] : memref<5x128x256xbf16, #tpu.memory_space<vmem>>, vector<1x128x256xbf16>
    %59 = vector.shape_cast %58 : vector<1x128x256xbf16> to vector<128x256xbf16>
    %cst_38 = arith.constant dense<0.000000e+00> : vector<51x256xf32>
    %60 = tpu.matmul %57, %59, %cst_38 {dimension_numbers = #tpu.dot_dimension_numbers<[1], [0], [0], [1], [0, 0, 1, 1], [], []>} : vector<51x128xbf16>, vector<128x256xbf16>, vector<51x256xf32> -> vector<51x256xf32>
    %61 = arith.addf %56, %60 : vector<51x256xf32>
    %c0_39 = arith.constant 0 : index
    %c0_40 = arith.constant 0 : index
    %62 = vector.load %arg5[%c0_39, %c0_40] : memref<1x256xf32, #tpu.memory_space<vmem>>, vector<1x256xf32>
    %63 = vector.broadcast %62 : vector<1x256xf32> to vector<51x256xf32>
    %64 = arith.addf %61, %63 : vector<51x256xf32>
    %cst_41 = arith.constant 0.000000e+00 : f32
    %65 = vector.broadcast %cst_41 : f32 to vector<51x256xf32>
    %66 = arith.maximumf %64, %65 : vector<51x256xf32>
    %67 = vector.extract_strided_slice %66 {offsets = [0, 0], sizes = [51, 128], strides = [1, 1]} : vector<51x256xf32> to vector<51x128xf32>
    %68 = vector.extract_strided_slice %66 {offsets = [0, 128], sizes = [51, 128], strides = [1, 1]} : vector<51x256xf32> to vector<51x128xf32>
    %69 = arith.maximumf %67, %68 : vector<51x128xf32>
    %70 = vector.extract_strided_slice %69 {offsets = [0, 0], sizes = [49, 128], strides = [1, 1]} : vector<51x128xf32> to vector<49x128xf32>
    %71 = vector.extract_strided_slice %69 {offsets = [2, 0], sizes = [49, 128], strides = [1, 1]} : vector<51x128xf32> to vector<49x128xf32>
    %72 = arith.maximumf %70, %71 : vector<49x128xf32>
    %73 = arith.truncf %72 : vector<49x128xf32> to vector<49x128xbf16>
    %74 = vector.extract_strided_slice %73 {offsets = [0, 0], sizes = [33, 128], strides = [1, 1]} : vector<49x128xbf16> to vector<33x128xbf16>
    %c0_42 = arith.constant 0 : index
    %c0_43 = arith.constant 0 : index
    %c0_44 = arith.constant 0 : index
    %75 = vector.load %arg6[%c0_42, %c0_43, %c0_44] : memref<5x128x128xbf16, #tpu.memory_space<vmem>>, vector<1x128x128xbf16>
    %76 = vector.shape_cast %75 : vector<1x128x128xbf16> to vector<128x128xbf16>
    %cst_45 = arith.constant dense<0.000000e+00> : vector<33x128xf32>
    %77 = tpu.matmul %74, %76, %cst_45 {dimension_numbers = #tpu.dot_dimension_numbers<[1], [0], [0], [1], [0, 0, 1, 1], [], []>} : vector<33x128xbf16>, vector<128x128xbf16>, vector<33x128xf32> -> vector<33x128xf32>
    %78 = vector.extract_strided_slice %73 {offsets = [4, 0], sizes = [33, 128], strides = [1, 1]} : vector<49x128xbf16> to vector<33x128xbf16>
    %c1_46 = arith.constant 1 : index
    %c0_47 = arith.constant 0 : index
    %c0_48 = arith.constant 0 : index
    %79 = vector.load %arg6[%c1_46, %c0_47, %c0_48] : memref<5x128x128xbf16, #tpu.memory_space<vmem>>, vector<1x128x128xbf16>
    %80 = vector.shape_cast %79 : vector<1x128x128xbf16> to vector<128x128xbf16>
    %cst_49 = arith.constant dense<0.000000e+00> : vector<33x128xf32>
    %81 = tpu.matmul %78, %80, %cst_49 {dimension_numbers = #tpu.dot_dimension_numbers<[1], [0], [0], [1], [0, 0, 1, 1], [], []>} : vector<33x128xbf16>, vector<128x128xbf16>, vector<33x128xf32> -> vector<33x128xf32>
    %82 = arith.addf %77, %81 : vector<33x128xf32>
    %83 = vector.extract_strided_slice %73 {offsets = [8, 0], sizes = [33, 128], strides = [1, 1]} : vector<49x128xbf16> to vector<33x128xbf16>
    %c2_50 = arith.constant 2 : index
    %c0_51 = arith.constant 0 : index
    %c0_52 = arith.constant 0 : index
    %84 = vector.load %arg6[%c2_50, %c0_51, %c0_52] : memref<5x128x128xbf16, #tpu.memory_space<vmem>>, vector<1x128x128xbf16>
    %85 = vector.shape_cast %84 : vector<1x128x128xbf16> to vector<128x128xbf16>
    %cst_53 = arith.constant dense<0.000000e+00> : vector<33x128xf32>
    %86 = tpu.matmul %83, %85, %cst_53 {dimension_numbers = #tpu.dot_dimension_numbers<[1], [0], [0], [1], [0, 0, 1, 1], [], []>} : vector<33x128xbf16>, vector<128x128xbf16>, vector<33x128xf32> -> vector<33x128xf32>
    %87 = arith.addf %82, %86 : vector<33x128xf32>
    %88 = vector.extract_strided_slice %73 {offsets = [12, 0], sizes = [33, 128], strides = [1, 1]} : vector<49x128xbf16> to vector<33x128xbf16>
    %c3_54 = arith.constant 3 : index
    %c0_55 = arith.constant 0 : index
    %c0_56 = arith.constant 0 : index
    %89 = vector.load %arg6[%c3_54, %c0_55, %c0_56] : memref<5x128x128xbf16, #tpu.memory_space<vmem>>, vector<1x128x128xbf16>
    %90 = vector.shape_cast %89 : vector<1x128x128xbf16> to vector<128x128xbf16>
    %cst_57 = arith.constant dense<0.000000e+00> : vector<33x128xf32>
    %91 = tpu.matmul %88, %90, %cst_57 {dimension_numbers = #tpu.dot_dimension_numbers<[1], [0], [0], [1], [0, 0, 1, 1], [], []>} : vector<33x128xbf16>, vector<128x128xbf16>, vector<33x128xf32> -> vector<33x128xf32>
    %92 = arith.addf %87, %91 : vector<33x128xf32>
    %93 = vector.extract_strided_slice %73 {offsets = [16, 0], sizes = [33, 128], strides = [1, 1]} : vector<49x128xbf16> to vector<33x128xbf16>
    %c4_58 = arith.constant 4 : index
    %c0_59 = arith.constant 0 : index
    %c0_60 = arith.constant 0 : index
    %94 = vector.load %arg6[%c4_58, %c0_59, %c0_60] : memref<5x128x128xbf16, #tpu.memory_space<vmem>>, vector<1x128x128xbf16>
    %95 = vector.shape_cast %94 : vector<1x128x128xbf16> to vector<128x128xbf16>
    %cst_61 = arith.constant dense<0.000000e+00> : vector<33x128xf32>
    %96 = tpu.matmul %93, %95, %cst_61 {dimension_numbers = #tpu.dot_dimension_numbers<[1], [0], [0], [1], [0, 0, 1, 1], [], []>} : vector<33x128xbf16>, vector<128x128xbf16>, vector<33x128xf32> -> vector<33x128xf32>
    %97 = arith.addf %92, %96 : vector<33x128xf32>
    %c0_62 = arith.constant 0 : index
    %c0_63 = arith.constant 0 : index
    %98 = vector.load %arg7[%c0_62, %c0_63] : memref<1x128xf32, #tpu.memory_space<vmem>>, vector<1x128xf32>
    %99 = vector.broadcast %98 : vector<1x128xf32> to vector<33x128xf32>
    %100 = arith.addf %97, %99 : vector<33x128xf32>
    %cst_64 = arith.constant 0.000000e+00 : f32
    %101 = vector.broadcast %cst_64 : f32 to vector<33x128xf32>
    %102 = arith.maximumf %100, %101 : vector<33x128xf32>
    %103 = tpu.iota {dimensions = array<i32: 0>} : vector<2x33xi32>
    %104 = tpu.iota {dimensions = array<i32: 1>} : vector<2x33xi32>
    %c32_i32 = arith.constant 32 : i32
    %105 = vector.broadcast %c32_i32 : i32 to vector<2x33xi32>
    %106 = arith.muli %103, %105 : vector<2x33xi32>
    %107 = arith.cmpi eq, %104, %106 : vector<2x33xi32>
    %108 = arith.extui %107 : vector<2x33xi1> to vector<2x33xi32>
    %109 = arith.sitofp %108 : vector<2x33xi32> to vector<2x33xf32>
    %cst_65 = arith.constant dense<0.000000e+00> : vector<2x128xf32>
    %110 = tpu.matmul %109, %102, %cst_65 {dimension_numbers = #tpu.dot_dimension_numbers<[1], [0], [0], [1], [0, 0, 1, 1], [], []>} : vector<2x33xf32>, vector<33x128xf32>, vector<2x128xf32> -> vector<2x128xf32>
    %111 = arith.truncf %110 : vector<2x128xf32> to vector<2x128xbf16>
    %c0_66 = arith.constant 0 : index
    %c0_67 = arith.constant 0 : index
    %112 = vector.load %arg8[%c0_66, %c0_67] : memref<128x128xbf16, #tpu.memory_space<vmem>>, vector<128x128xbf16>
    %cst_68 = arith.constant dense<0.000000e+00> : vector<2x128xf32>
    %113 = tpu.matmul %111, %112, %cst_68 {dimension_numbers = #tpu.dot_dimension_numbers<[1], [0], [0], [1], [0, 0, 1, 1], [], []>} : vector<2x128xbf16>, vector<128x128xbf16>, vector<2x128xf32> -> vector<2x128xf32>
    %c0_69 = arith.constant 0 : index
    %c0_70 = arith.constant 0 : index
    %114 = vector.load %arg9[%c0_69, %c0_70] : memref<1x128xf32, #tpu.memory_space<vmem>>, vector<1x128xf32>
    %115 = vector.broadcast %114 : vector<1x128xf32> to vector<2x128xf32>
    %116 = arith.addf %113, %115 : vector<2x128xf32>
    %cst_71 = arith.constant 0.000000e+00 : f32
    %117 = vector.broadcast %cst_71 : f32 to vector<2x128xf32>
    %118 = arith.maximumf %116, %117 : vector<2x128xf32>
    %119 = arith.truncf %118 : vector<2x128xf32> to vector<2x128xbf16>
    %c0_72 = arith.constant 0 : index
    %c0_73 = arith.constant 0 : index
    %120 = vector.load %arg10[%c0_72, %c0_73] : memref<128x128xbf16, #tpu.memory_space<vmem>>, vector<128x128xbf16>
    %cst_74 = arith.constant dense<0.000000e+00> : vector<2x128xf32>
    %121 = tpu.matmul %119, %120, %cst_74 {dimension_numbers = #tpu.dot_dimension_numbers<[1], [0], [0], [1], [0, 0, 1, 1], [], []>} : vector<2x128xbf16>, vector<128x128xbf16>, vector<2x128xf32> -> vector<2x128xf32>
    %c0_75 = arith.constant 0 : index
    %c0_76 = arith.constant 0 : index
    %122 = vector.load %arg11[%c0_75, %c0_76] : memref<1x128xf32, #tpu.memory_space<vmem>>, vector<1x128xf32>
    %123 = vector.broadcast %122 : vector<1x128xf32> to vector<2x128xf32>
    %124 = arith.addf %121, %123 : vector<2x128xf32>
    %c0_77 = arith.constant 0 : index
    %c0_78 = arith.constant 0 : index
    %125 = vector.load %arg12[%c0_77, %c0_78] : memref<2x128xf32, #tpu.memory_space<vmem>>, vector<2x128xf32>
    tpu.vector_store %arg12[%c0_77, %c0_78], %124 {strides = array<i32>} : memref<2x128xf32, #tpu.memory_space<vmem>>, vector<2x128xf32>,
    return
  }
  func.func @transform_0(%arg0: i32) -> (i32, i32) {
    %c0_i32 = arith.constant 0 : i32
    %c0_i32_0 = arith.constant 0 : i32
    return %arg0, %c0_i32 : i32, i32
  }
  func.func @transform_1(%arg0: i32) -> (i32, i32, i32) {
    %c0_i32 = arith.constant 0 : i32
    %c0_i32_0 = arith.constant 0 : i32
    %c0_i32_1 = arith.constant 0 : i32
    %c0_i32_2 = arith.constant 0 : i32
    return %c0_i32, %c0_i32_0, %c0_i32_1 : i32, i32, i32
  }
  func.func @transform_2(%arg0: i32) -> (i32, i32) {
    %c0_i32 = arith.constant 0 : i32
    %c0_i32_0 = arith.constant 0 : i32
    %c0_i32_1 = arith.constant 0 : i32
    return %c0_i32, %c0_i32_0 : i32, i32
  }
  func.func @transform_3(%arg0: i32) -> (i32, i32, i32) {
    %c0_i32 = arith.constant 0 : i32
    %c0_i32_0 = arith.constant 0 : i32
    %c0_i32_1 = arith.constant 0 : i32
    %c0_i32_2 = arith.constant 0 : i32
    return %c0_i32, %c0_i32_0, %c0_i32_1 : i32, i32, i32
  }
  func.func @transform_4(%arg0: i32) -> (i32, i32) {
    %c0_i32 = arith.constant 0 : i32
    %c0_i32_0 = arith.constant 0 : i32
    %c0_i32_1 = arith.constant 0 : i32
    return %c0_i32, %c0_i32_0 : i32, i32
  }
  func.func @transform_5(%arg0: i32) -> (i32, i32, i32) {
    %c0_i32 = arith.constant 0 : i32
    %c0_i32_0 = arith.constant 0 : i32
    %c0_i32_1 = arith.constant 0 : i32
    %c0_i32_2 = arith.constant 0 : i32
    return %c0_i32, %c0_i32_0, %c0_i32_1 : i32, i32, i32
  }
  func.func @transform_6(%arg0: i32) -> (i32, i32) {
    %c0_i32 = arith.constant 0 : i32
    %c0_i32_0 = arith.constant 0 : i32
    %c0_i32_1 = arith.constant 0 : i32
    return %c0_i32, %c0_i32_0 : i32, i32
  }
  func.func @transform_7(%arg0: i32) -> (i32, i32) {
    %c0_i32 = arith.constant 0 : i32
    %c0_i32_0 = arith.constant 0 : i32
    %c0_i32_1 = arith.constant 0 : i32
    return %c0_i32, %c0_i32_0 : i32, i32
  }
  func.func @transform_8(%arg0: i32) -> (i32, i32) {
    %c0_i32 = arith.constant 0 : i32
    %c0_i32_0 = arith.constant 0 : i32
    %c0_i32_1 = arith.constant 0 : i32
    return %c0_i32, %c0_i32_0 : i32, i32
  }
  func.func @transform_9(%arg0: i32) -> (i32, i32) {
    %c0_i32 = arith.constant 0 : i32
    %c0_i32_0 = arith.constant 0 : i32
    %c0_i32_1 = arith.constant 0 : i32
    return %c0_i32, %c0_i32_0 : i32, i32
  }
  func.func @transform_10(%arg0: i32) -> (i32, i32) {
    %c0_i32 = arith.constant 0 : i32
    %c0_i32_0 = arith.constant 0 : i32
    %c0_i32_1 = arith.constant 0 : i32
    return %c0_i32, %c0_i32_0 : i32, i32
  }
  func.func @transform_11(%arg0: i32) -> (i32, i32) {
    %c0_i32 = arith.constant 0 : i32
    %c0_i32_0 = arith.constant 0 : i32
    return %arg0, %c0_i32 : i32, i32
  }
}

</mosaic_0001>

<bundles_post_ra>
// kernel: _lambda_.1
= control target key start
LH: loop header
LB: loop body
LE: loop exit
PB: predicated region body
PF: predicated region fallthrough
CT: control target
= control target key end

     0   :  { %v3768_v2 = vmov 0   ;;  %vm61_vm0 = vsmask.f32 7424  ;;  %vm113_vm1 = vcmask 261120   ;;  %vm443_vm2 = vsmask.f32 6400  ;;  %s4740_s0 = inlined_call_operand.vmem [shape: f32[64,32], index: 0, kind: input, shape index: {}]   ;;  %s4741_s1 = inlined_call_operand.vmem [shape: bf16[5,32,256], index: 1, kind: input, shape index: {}]   ;;  %s4742_s2 = inlined_call_operand.vmem [shape: f32[1,256], index: 2, kind: input, shape index: {}]   ;;  %s4743_s3 = inlined_call_operand.vmem [shape: bf16[5,128,256], index: 3, kind: input, shape index: {}]   ;;  %s4744_s4 = inlined_call_operand.vmem [shape: f32[1,256], index: 4, kind: input, shape index: {}]   ;;  %s4745_s5 = inlined_call_operand.vmem [shape: bf16[5,128,128], index: 5, kind: input, shape index: {}]   ;;  %s4746_s6 = inlined_call_operand.vmem [shape: f32[1,128], index: 6, kind: input, shape index: {}]   ;;  %s4747_s7 = inlined_call_operand.vmem [shape: bf16[128,128], index: 7, kind: input, shape index: {}]   ;;  %s4748_s8 = inlined_call_operand.vmem [shape: f32[1,128], index: 8, kind: input, shape index: {}]   ;;  %s4749_s9 = inlined_call_operand.vmem [shape: bf16[128,128], index: 9, kind: input, shape index: {}]   ;;  %s4750_s10 = inlined_call_operand.vmem [shape: f32[1,128], index: 10, kind: input, shape index: {}]   ;;  %s4751_s11 = inlined_call_operand.hbm [shape: f32[2,128], index: 11, kind: output, shape index: {}]  }
   0x1   :  { %v3538_v0 = vld [vmem:[%s4741_s1 + $0x24] ss:$8 sps:$4 sm:$0xff]   ;;  %v3540_v1 = vld [vmem:[%s4741_s1 + $0x20] ss:$8 sps:$4 sm:$0xff]   ;;  %158 = vmatprep.mubr.bf16.mxu0 %v3768_v2  ;;  %970 = vmatprep.mubr.bf16.mxu1 %v3768_v2  ;;  %v3541_v3 = vld [vmem:[%s4741_s1 + $0x34] ss:$8 sps:$4 sm:$0xff]  }
   0x2   :  { %126 = vmatprep.subr.bf16.mxu0 %v3538_v0  ;;  %v3543_v4 = vld [vmem:[%s4741_s1 + $0x30] ss:$8 sps:$4 sm:$0xff]   ;;  %v40_v5 = vld [vmem:[%s4740_s0] sm:$0xff]  ;;  %v41_v6 = vld [vmem:[%s4740_s0 + $0x8] sm:$0xff]  ;;  %vm309_vm3 = vcmask 1046528   ;;  %vm585_vm4 = vcmask 1045504  }
   0x3   :  { %127 = vmatpush1.bf16.msra.mxu0 %v3540_v1  ;;  %v42_v7 = vld [vmem:[%s4740_s0 + $0x10] sm:$0xff]  ;;  %v43_v8 = vld [vmem:[%s4740_s0 + $0x18] sm:$0xff]  ;;  %v3859_v9 = vpack.c.bf16 %v41_v6, %v40_v5  ;;  %v44_v11 = vld [vmem:[%s4740_s0 + $0x20] sm:$0xff] }
   0x4   :  { %128 = vmatprep.subr.bf16.mxu0 %v3541_v3  ;;  %v3861_v10 = vpack.c.bf16 %v43_v8, %v42_v7  ;;  %v45_v12 = vld [vmem:[%s4740_s0 + $0x28] sm:$0xff]  ;;  %v46_v18 = vld [vmem:[%s4740_s0 + $0x30] sm:$0xff]  ;;  %v47_v19 = vld [vmem:[%s4740_s0 + $0x38] sm:$0xff] }
   0x5   :  { %v3869_v13 = vpack.c.bf16 %v45_v12, %v44_v11  ;;  %v3546_v14 = vld [vmem:[%s4741_s1 + $0x4] ss:$8 sps:$4 sm:$0xff]   ;;  %v63_v15 = vshrl.u32 %v3859_v9, 16  ;;  %v65_v16 = vshll.u32 %v3859_v9, 16  ;;  %v3885_v22 = vpack.c.bf16 %v47_v19, %v46_v18  ;;  %v3544_v30 = vld [vmem:[%s4741_s1] ss:$8 sps:$4 sm:$0xff]  }
   0x6   :  { %v70_v17 = vshll.u32 %v3861_v10, 16  ;;  %v74_v20 = vshrl.u32 %v3861_v10, 16  ;;  %v3549_v34 = vld [vmem:[%s4741_s1 + $0x14] ss:$8 sps:$4 sm:$0xff]   ;;  %v310_v38 = vrot.slane %v3859_v9, 1  ;;  %v311_v39 = vrot.slane %v3861_v10, 1 }
   0x7   :  { %129 = vmatpush1.bf16.msra.mxu0 %v3543_v4  ;;  %v78_v21 = vshll.u32 %v3869_v13, 16  ;;  %v67_v23 = vrot.slane %v65_v16, 1  ;;  %v444_v25 = vrot.slane %v63_v15, 1  ;;  %v445_v26 = vrot.slane %v65_v16, 2  ;;  %v3547_v44 = vld [vmem:[%s4741_s1 + $0x10] ss:$8 sps:$4 sm:$0xff]  }
   0x8   :  { %v72_v24 = vrot.slane %v70_v17, 1  ;;  %227 = vmatprep.subr.bf16.mxu0 %v3546_v14  ;;  %v448_v27 = vrot.slane %v70_v17, 2  ;;  %v447_v28 = vrot.slane %v74_v20, 1  ;;  %v82_v33 = vshrl.u32 %v3869_v13, 16  ;;  %v3552_v49 = vld [vmem:[%s4741_s1 + $0x44] ss:$8 sps:$4 sm:$0xff]  }
   0x9   :  { %v68_v29 = vor.u32 %v67_v23, %v63_v15  ;;  %v446_v31 = vor.u32 %v445_v26, %v444_v25  ;;  %v80_v32 = vrot.slane %v78_v21, 1  ;;  %v86_v37 = vshll.u32 %v3885_v22, 16  ;;  %v3550_v7 = vld [vmem:[%s4741_s1 + $0x40] ss:$8 sps:$4 sm:$0xff]   ;;  %v3555_v8 = vld [vmem:[%s4741_s1 + $0x54] ss:$8 sps:$4 sm:$0xff]  }
   0xa   :  { %v449_v35 = vor.u32 %v448_v27, %v447_v28  ;;  %v76_v40 = vor.u32 %v74_v20, %v72_v24  ;;  %v90_v41 = vshrl.u32 %v3885_v22, 16  ;;  %v313_v42 = vrot.slane %v3869_v13, 1  ;;  %v3553_v11 = vld [vmem:[%s4741_s1 + $0x50] ss:$8 sps:$4 sm:$0xff]   ;;  %v3558_v12 = vld [vmem:[%s4741_s1 + $0x64] ss:$8 sps:$4 sm:$0xff]  }
   0xb   :  { %v73_v36 = vsel %vm61_vm0, %v68_v29, %v72_v24  ;;  %v315_v43 = vrot.slane %v3885_v22, 1  ;;  %v312_v45 = vsel %vm309_vm3, %v310_v38, %v311_v39  ;;  %v451_v47 = vrot.slane %v82_v33, 1  ;;  %v3559_v14 = vld [vmem:[%s4741_s1 + $0x70] ss:$8 sps:$4 sm:$0xff]  }
   0xc   :  { %2825 = vmatmul.mubr.msk.bf16.vlgmr.msra.gmra.mrb[0].mxu0 %vm113_vm1, %v73_v36  ;;  %v3908_v46 = vsel %vm443_vm2, %v446_v31, %v449_v35  ;;  %v452_v48 = vrot.slane %v78_v21, 2  ;;  %v314_v50 = vsel %vm309_vm3, %v311_v39, %v313_v42  ;;  %v455_v52 = vrot.slane %v90_v41, 1 }
   0xd   :  { %168 = vmatprep.mubr.bf16.mxu0 %v3768_v2  ;;  %228 = vmatpush1.bf16.msra.mxu0 %v3544_v30  ;;  %v316_v51 = vsel %vm309_vm3, %v313_v42, %v315_v43  ;;  %v456_v53 = vrot.slane %v86_v37, 2  ;;  %v586_v55 = vrot.slane %v3859_v9, 2  ;;  %v587_v57 = vrot.slane %v3861_v10, 2 }
   0xe   :  { %229 = vmatprep.subr.bf16.mxu0 %v3549_v34  ;;  %v453_v54 = vor.u32 %v452_v48, %v451_v47  ;;  %v589_v58 = vrot.slane %v3869_v13, 2  ;;  %v81_v59 = vsel %vm61_vm0, %v76_v40, %v80_v32  ;;  %v84_v0 = vor.u32 %v82_v33, %v80_v32 }
   0xf   :  { %v3918_v56 = vor.u32 %v456_v53, %v455_v52  ;;  %v588_v62 = vsel %vm585_vm4, %v586_v55, %v587_v57  ;;  %v88_v1 = vrot.slane %v86_v37, 1  ;;  %v591_v3 = vrot.slane %v3885_v22, 2 }
  0x10   :  { %v454_v60 = vsel %vm443_vm2, %v449_v35, %v453_v54  ;;  %v590_v63 = vsel %vm585_vm4, %v587_v57, %v589_v58 }
  0x11   :  { %230 = vmatpush1.bf16.msra.mxu0 %v3547_v44  ;;  %v458_v61 = vsel %vm443_vm2, %v453_v54, %v3918_v56  ;;  %v592_v4 = vsel %vm585_vm4, %v589_v58, %v591_v3  ;;  %v89_v5 = vsel %vm61_vm0, %v84_v0, %v88_v1  ;;  %v92_v6 = vor.u32 %v90_v41, %v88_v1 }
  0x12   :  { %349 = vmatprep.subr.bf16.mxu0 %v3552_v49 }
  0x14   :  { %2826 = vmatmul.mubr.msk.bf16.gmra.mrb[4].mxu0 %vm113_vm1, %v81_v59 }
  0x15   :  { %178 = vmatprep.mubr.bf16.mxu0 %v3768_v2 }
  0x1c   :  { %2827 = vmatmul.mubr.msk.bf16.gmra.mrb[8].mxu0 %vm113_vm1, %v89_v5 }
  0x1d   :  { %188 = vmatprep.mubr.bf16.mxu0 %v3768_v2 }
  0x24   :  { %2828 = vmatmul.mubr.msk.bf16.gmra.mrb[12].mxu0 %vm113_vm1, %v92_v6 }
  0x25   :  { %259 = vmatprep.mubr.bf16.mxu0 %v3768_v2 }
  0x2c   :  { %2833 = vmatmul.mubr.msk.bf16.vlgmr.msra.gmra.mrb[0].mxu0 %vm113_vm1, %v3859_v9  ;;  %v3556_v9 = vld [vmem:[%s4741_s1 + $0x60] ss:$8 sps:$4 sm:$0xff]  }
  0x2d   :  { %269 = vmatprep.mubr.bf16.mxu0 %v3768_v2  ;;  %350 = vmatpush1.bf16.msra.mxu0 %v3550_v7 }
  0x2e   :  { %351 = vmatprep.subr.bf16.mxu0 %v3555_v8 }
  0x31   :  { %352 = vmatpush1.bf16.msra.mxu0 %v3553_v11 }
  0x32   :  { %491 = vmatprep.subr.bf16.mxu0 %v3558_v12 }
  0x34   :  { %2834 = vmatmul.mubr.msk.bf16.gmra.mrb[4].mxu0 %vm113_vm1, %v3861_v10  ;;  %v3561_v10 = vld [vmem:[%s4741_s1 + $0x74] ss:$8 sps:$4 sm:$0xff]  }
  0x35   :  { %279 = vmatprep.mubr.bf16.mxu0 %v3768_v2 }
  0x3c   :  { %2835 = vmatmul.mubr.msk.bf16.gmra.mrb[8].mxu0 %vm113_vm1, %v3869_v13  ;;  %v3564_v13 = vld [vmem:[%s4741_s1 + $0x84] ss:$8 sps:$4 sm:$0xff]  }
  0x3d   :  { %289 = vmatprep.mubr.bf16.mxu0 %v3768_v2 }
  0x44   :  { %2836 = vmatmul.mubr.msk.bf16.gmra.mrb[12].mxu0 %vm113_vm1, %v3885_v22 }
  0x45   :  { %381 = vmatprep.mubr.bf16.mxu0 %v3768_v2 }
  0x4c   :  { %2845 = vmatmul.mubr.msk.bf16.vlgmr.msra.gmra.mrb[0].mxu0 %vm113_vm1, %v312_v45 }
  0x4d   :  { %391 = vmatprep.mubr.bf16.mxu0 %v3768_v2  ;;  %492 = vmatpush1.bf16.msra.mxu0 %v3556_v9 }
  0x4e   :  { %493 = vmatprep.subr.bf16.mxu0 %v3561_v10 }
  0x51   :  { %494 = vmatpush1.bf16.msra.mxu0 %v3559_v14 }
  0x52   :  { %16 = vsyncpa [#allocation3], 0  ;;  %625 = vmatprep.subr.bf16.mxu0 %v3564_v13  ;;  %v3562_v15 = vld [vmem:[%s4741_s1 + $0x80] ss:$8 sps:$4 sm:$0xff]   ;;  %v3567_v16 = vld [vmem:[%s4741_s1 + $0x94] ss:$8 sps:$4 sm:$0xff]   ;;  %v716_v35 = vlaneseq }
  0x53   :  { %v3565_v17 = vld [vmem:[%s4741_s1 + $0x90] ss:$8 sps:$4 sm:$0xff]   ;;  %v3568_v18 = vld [vmem:[%s4743_s3 + $0x84] ss:$8 sps:$4 sm:$0xff]   ;;  %v3570_v19 = vld [vmem:[%s4743_s3 + $0x80] ss:$8 sps:$4 sm:$0xff]  }
  0x54   :  { %2846 = vmatmul.mubr.msk.bf16.gmra.mrb[4].mxu0 %vm113_vm1, %v314_v50  ;;  %938 = vmatprep.subr.bf16.mxu1 %v3568_v18  ;;  %v3571_v20 = vld [vmem:[%s4743_s3 + $0x94] ss:$8 sps:$4 sm:$0xff]   ;;  %v3573_v21 = vld [vmem:[%s4743_s3 + $0x90] ss:$8 sps:$4 sm:$0xff]   ;;  %v3574_v22 = vld [vmem:[%s4743_s3 + $0xa4] ss:$8 sps:$4 sm:$0xff]  }
  0x55   :  { %401 = vmatprep.mubr.bf16.mxu0 %v3768_v2  ;;  %939 = vmatpush1.bf16.msra.mxu1 %v3570_v19  ;;  %v3576_v23 = vld [vmem:[%s4743_s3 + $0xa0] ss:$8 sps:$4 sm:$0xff]   ;;  %v3577_v24 = vld [vmem:[%s4743_s3 + $0xb4] ss:$8 sps:$4 sm:$0xff]   ;;  %v3579_v25 = vld [vmem:[%s4743_s3 + $0xb0] ss:$8 sps:$4 sm:$0xff]  }
  0x56   :  { %940 = vmatprep.subr.bf16.mxu1 %v3571_v20  ;;  %v3580_v26 = vld [vmem:[%s4743_s3 + $0xc4] ss:$8 sps:$4 sm:$0xff]   ;;  %v3582_v27 = vld [vmem:[%s4743_s3 + $0xc0] ss:$8 sps:$4 sm:$0xff]   ;;  %v3583_v28 = vld [vmem:[%s4743_s3 + $0xd4] ss:$8 sps:$4 sm:$0xff]  }
  0x57   :  { %v3585_v29 = vld [vmem:[%s4743_s3 + $0xd0] ss:$8 sps:$4 sm:$0xff]   ;;  %v3586_v30 = vld [vmem:[%s4743_s3 + $0xe4] ss:$8 sps:$4 sm:$0xff]   ;;  %v3588_v31 = vld [vmem:[%s4743_s3 + $0xe0] ss:$8 sps:$4 sm:$0xff]  }
  0x58   :  { %v3589_v32 = vld [vmem:[%s4743_s3 + $0xf4] ss:$8 sps:$4 sm:$0xff]   ;;  %v3591_v33 = vld [vmem:[%s4743_s3 + $0xf0] ss:$8 sps:$4 sm:$0xff]   ;;  %v3594_v34 = vld [vmem:[%s4743_s3 + $0x4] ss:$8 sps:$4 sm:$0xff]  }
  0x59   :  { %941 = vmatpush1.bf16.msra.mxu1 %v3573_v21  ;;  %v4061_v36 = vshrl.u32 %v716_v35, 7  ;;  %v714_v38 = vld [vmem:[%s4742_s2] sm:$0x3]  ;;  %vm1370_vm5 = vcmask 1044480   ;;  %vm1564_vm6 = vcmask 1043456   ;;  %vm3770_vm7 = vmmov 0  }
  0x5a   :  { %942 = vmatprep.subr.bf16.mxu1 %v3574_v22  ;;  %vm2230_vm8 = vcmask 1041408   ;;  %vm2503_vm10 = vcmask 1040384   ;;  %vm2499_vm11 = vcmask 269312   ;;  %s3772_s19 = smov [#allocation2]  }
  0x5b   :  { %v718_v37 = vsub.s32 0, %v4061_v36  ;;  %v722_v39 = vsub.s32 1, %v4061_v36  ;;  %s2809_s20 = sshll.u32 %s3772_s19, 4  ;;  %s2810_s20 = int_to_ptr.vmem [resolvable:$true] %s2809_s20 }
  0x5c   :  { %2847 = vmatmul.mubr.msk.bf16.gmra.mrb[8].mxu0 %vm113_vm1, %v316_v51  ;;  %p3749_p1 = scmp.lt.s32.totalorder %s2810_s20, %s2810_s20 }
  0x5d   :  { %411 = vmatprep.mubr.bf16.mxu0 %v3768_v2  ;;  %943 = vmatpush1.bf16.msra.mxu1 %v3576_v23  ;;  %v4070_v40 = vrot.slane %v714_v38, %v718_v37  ;;  %v4074_v41 = vrot.slane %v714_v38, %v722_v39 }
  0x5e   :  { %944 = vmatprep.subr.bf16.mxu1 %v3577_v24 }
  0x61   :  { %945 = vmatpush1.bf16.msra.mxu1 %v3579_v25 }
  0x62   :  { %946 = vmatprep.subr.bf16.mxu1 %v3580_v26 }
  0x64   :  { %2848 = vmatmul.mubr.msk.bf16.gmra.mrb[12].mxu0 %vm113_vm1, %v315_v43 }
  0x65   :  { %523 = vmatprep.mubr.bf16.mxu0 %v3768_v2  ;;  %947 = vmatpush1.bf16.msra.mxu1 %v3582_v27 }
  0x66   :  { %948 = vmatprep.subr.bf16.mxu1 %v3583_v28 }
  0x69   :  { %949 = vmatpush1.bf16.msra.mxu1 %v3585_v29 }
  0x6a   :  { %950 = vmatprep.subr.bf16.mxu1 %v3586_v30 }
  0x6c   :  { %2857 = vmatmul.mubr.msk.bf16.vlgmr.msra.gmra.mrb[0].mxu0 %vm113_vm1, %v3908_v46 }
  0x6d   :  { %533 = vmatprep.mubr.bf16.mxu0 %v3768_v2  ;;  %626 = vmatpush1.bf16.msra.mxu0 %v3562_v15 }
  0x6e   :  { %627 = vmatprep.subr.bf16.mxu0 %v3567_v16  ;;  %951 = vmatpush1.bf16.msra.mxu1 %v3588_v31 }
  0x6f   :  { %952 = vmatprep.subr.bf16.mxu1 %v3589_v32 }
  0x71   :  { %628 = vmatpush1.bf16.msra.mxu0 %v3565_v17 }
  0x72   :  { %953 = vmatpush1.bf16.msra.mxu1 %v3591_v33 }
  0x73   :  { %1089 = vmatprep.subr.bf16.mxu1 %v3594_v34 }
  0x74   :  { %2858 = vmatmul.mubr.msk.bf16.gmra.mrb[4].mxu0 %vm113_vm1, %v454_v60 }
  0x75   :  { %543 = vmatprep.mubr.bf16.mxu0 %v3768_v2 }
  0x7c   :  { %2859 = vmatmul.mubr.msk.bf16.gmra.mrb[8].mxu0 %vm113_vm1, %v458_v61 }
  0x7d   :  { %553 = vmatprep.mubr.bf16.mxu0 %v3768_v2 }
  0x84   :  { %2860 = vmatmul.mubr.msk.bf16.gmra.mrb[12].mxu0 %vm113_vm1, %v3918_v56 }
  0x85   :  { %657 = vmatprep.mubr.bf16.mxu0 %v3768_v2 }
  0x8c   :  { %2869 = vmatmul.mubr.msk.bf16.vlgmr.msra.gmra.mrb[0].mxu0 %vm113_vm1, %v588_v62 }
  0x8d   :  { %667 = vmatprep.mubr.bf16.mxu0 %v3768_v2 }
  0x94   :  { %2870 = vmatmul.mubr.msk.bf16.gmra.mrb[4].mxu0 %vm113_vm1, %v590_v63 }
  0x95   :  { %677 = vmatprep.mubr.bf16.mxu0 %v3768_v2 }
  0x9c   :  { %2871 = vmatmul.mubr.msk.bf16.gmra.mrb[8].mxu0 %vm113_vm1, %v592_v4 }
  0x9d   :  { %687 = vmatprep.mubr.bf16.mxu0 %v3768_v2 }
  0xa4   :  { %2872 = vmatmul.mubr.msk.bf16.gmra.mrb[12].mxu0 %vm113_vm1, %v591_v3 }
 0x15f   :  { %v659_v42 = vpop.f32.mrb[0].mxu0 }
 0x160   :  { %v726_v43 = vadd.f32 %v4070_v40, %v659_v42  ;;  %v661_v44 = vpop.f32.mrb[1].mxu0 }
 0x161   :  { %v727_v45 = vadd.f32 %v4074_v41, %v661_v44  ;;  %v663_v46 = vpop.f32.mrb[2].mxu0 }
 0x162   :  { %v742_v47 = vmax.f32 %v726_v43, 0.0  ;;  %v728_v48 = vadd.f32 %v4070_v40, %v663_v46  ;;  %v665_v49 = vpop.f32.mrb[3].mxu0 }
 0x163   :  { %v743_v50 = vmax.f32 %v727_v45, 0.0  ;;  %v729_v51 = vadd.f32 %v4074_v41, %v665_v49 }
 0x164   :  { %v744_v52 = vmax.f32 %v728_v48, 0.0 }
 0x165   :  { %v758_v53 = vmax.f32 %v742_v47, %v743_v50  ;;  %v745_v54 = vmax.f32 %v729_v51, 0.0 }
 0x167   :  { %v759_v55 = vmax.f32 %v744_v52, %v745_v54  ;;  %v669_v56 = vpop.f32.mrb[4].mxu0  ;;  %v775_v59 = vrot.slane %v758_v53, 1 }
 0x168   :  { %v730_v57 = vadd.f32 %v4070_v40, %v669_v56  ;;  %v671_v58 = vpop.f32.mrb[5].mxu0 }
 0x169   :  { %v776_v60 = vrot.slane %v759_v55, 1  ;;  %v731_v61 = vadd.f32 %v4074_v41, %v671_v58  ;;  %v673_v62 = vpop.f32.mrb[6].mxu0 }
 0x16a   :  { %v746_v63 = vmax.f32 %v730_v57, 0.0  ;;  %v732_v0 = vadd.f32 %v4070_v40, %v673_v62  ;;  %v675_v1 = vpop.f32.mrb[7].mxu0 }
 0x16b   :  { %v777_v3 = vsel %vm309_vm3, %v775_v59, %v776_v60  ;;  %v747_v4 = vmax.f32 %v731_v61, 0.0  ;;  %v733_v5 = vadd.f32 %v4074_v41, %v675_v1 }
 0x16c   :  { %v798_v6 = vmax.f32 %v758_v53, %v777_v3  ;;  %v748_v7 = vmax.f32 %v732_v0, 0.0 }
 0x16d   :  { %v760_v8 = vmax.f32 %v746_v63, %v747_v4  ;;  %v749_v11 = vmax.f32 %v733_v5, 0.0  ;;  %v3597_v4 = vld [vmem:[%s4743_s3 + $0x14] ss:$8 sps:$4 sm:$0xff]  }
 0x16f   :  { %v778_v12 = vrot.slane %v760_v8, 1  ;;  %v761_v9 = vmax.f32 %v748_v7, %v749_v11  ;;  %v679_v10 = vpop.f32.mrb[8].mxu0 }
 0x170   :  { %v734_v14 = vadd.f32 %v4070_v40, %v679_v10  ;;  %v681_v13 = vpop.f32.mrb[9].mxu0  ;;  %v3595_v10 = vld [vmem:[%s4743_s3 + $0x10] ss:$8 sps:$4 sm:$0xff]  }
 0x171   :  { %v779_v15 = vsel %vm309_vm3, %v776_v60, %v778_v12  ;;  %v780_v16 = vrot.slane %v761_v9, 1  ;;  %v735_v17 = vadd.f32 %v4074_v41, %v681_v13  ;;  %v683_v18 = vpop.f32.mrb[10].mxu0 }
 0x172   :  { %v799_v19 = vmax.f32 %v759_v55, %v779_v15  ;;  %v750_v20 = vmax.f32 %v734_v14, 0.0  ;;  %v736_v21 = vadd.f32 %v4070_v40, %v683_v18  ;;  %v685_v22 = vpop.f32.mrb[11].mxu0  ;;  %v3600_v15 = vld [vmem:[%s4743_s3 + $0x24] ss:$8 sps:$4 sm:$0xff]  }
 0x173   :  { %v781_v23 = vsel %vm309_vm3, %v778_v12, %v780_v16  ;;  %v751_v24 = vmax.f32 %v735_v17, 0.0  ;;  %v737_v25 = vadd.f32 %v4074_v41, %v685_v22 }
 0x174   :  { %v4091_v26 = vpack.c.bf16 %v799_v19, %v798_v6  ;;  %v800_v27 = vmax.f32 %v760_v8, %v781_v23  ;;  %v752_v28 = vmax.f32 %v736_v21, 0.0  ;;  %v3603_v23 = vld [vmem:[%s4743_s3 + $0x34] ss:$8 sps:$4 sm:$0xff]  }
 0x175   :  { %v762_v29 = vmax.f32 %v750_v20, %v751_v24  ;;  %v753_v30 = vmax.f32 %v737_v25, 0.0  ;;  %v3598_v20 = vld [vmem:[%s4743_s3 + $0x20] ss:$8 sps:$4 sm:$0xff]  }
 0x176   :  { %v847_v53 = vrot.slane %v4091_v26, 1  ;;  %v1177_v57 = vrot.slane %v4091_v26, 2  ;;  %v1371_v60 = vrot.slane %v4091_v26, 3 }
 0x177   :  { %v782_v31 = vrot.slane %v762_v29, 1  ;;  %v763_v32 = vmax.f32 %v752_v28, %v753_v30  ;;  %v689_v33 = vpop.f32.mrb[12].mxu0 }
 0x178   :  { %v738_v34 = vadd.f32 %v4070_v40, %v689_v33  ;;  %v691_v38 = vpop.f32.mrb[13].mxu0 }
 0x179   :  { %v783_v42 = vsel %vm309_vm3, %v780_v16, %v782_v31  ;;  %v784_v43 = vrot.slane %v763_v32, 1  ;;  %v739_v44 = vadd.f32 %v4074_v41, %v691_v38  ;;  %v693_v45 = vpop.f32.mrb[14].mxu0 }
 0x17a   :  { %v801_v46 = vmax.f32 %v761_v9, %v783_v42  ;;  %v754_v47 = vmax.f32 %v738_v34, 0.0  ;;  %v740_v48 = vadd.f32 %v4070_v40, %v693_v45  ;;  %v695_v49 = vpop.f32.mrb[15].mxu0  ;;  %v1565_v40 = vrot.slane %v4091_v26, 4  ;;  %v3601_v34 = vld [vmem:[%s4743_s3 + $0x30] ss:$8 sps:$4 sm:$0xff]  }
 0x17b   :  { %v785_v50 = vsel %vm309_vm3, %v782_v31, %v784_v43  ;;  %v755_v51 = vmax.f32 %v739_v44, 0.0  ;;  %v741_v52 = vadd.f32 %v4074_v41, %v695_v49  ;;  %v3592_v41 = vld [vmem:[%s4743_s3] ss:$8 sps:$4 sm:$0xff]   ;;  %v3612_v49 = vld [vmem:[%s4743_s3 + $0x64] ss:$8 sps:$4 sm:$0xff]  }
 0x17c   :  { %v4100_v54 = vpack.c.bf16 %v801_v46, %v800_v27  ;;  %v802_v55 = vmax.f32 %v762_v29, %v785_v50  ;;  %v756_v56 = vmax.f32 %v740_v48, 0.0  ;;  %v3604_v46 = vld [vmem:[%s4743_s3 + $0x40] ss:$8 sps:$4 sm:$0xff]   ;;  %v3607_v48 = vld [vmem:[%s4743_s3 + $0x50] ss:$8 sps:$4 sm:$0xff]  }
 0x17d   :  { %v764_v58 = vmax.f32 %v754_v47, %v755_v51  ;;  %v757_v59 = vmax.f32 %v741_v52, 0.0  ;;  %v3609_v47 = vld [vmem:[%s4743_s3 + $0x54] ss:$8 sps:$4 sm:$0xff]   ;;  %v3610_v50 = vld [vmem:[%s4743_s3 + $0x60] ss:$8 sps:$4 sm:$0xff]  }
 0x17e   :  { %v848_v61 = vrot.slane %v4100_v54, 1  ;;  %v1178_v62 = vrot.slane %v4100_v54, 2  ;;  %v1372_v63 = vrot.slane %v4100_v54, 3  ;;  %v1566_v0 = vrot.slane %v4100_v54, 4  ;;  %v3615_v51 = vld [vmem:[%s4743_s3 + $0x74] ss:$8 sps:$4 sm:$0xff]  }
 0x17f   :  { %v786_v1 = vrot.slane %v764_v58, 1  ;;  %v765_v3 = vmax.f32 %v756_v56, %v757_v59  ;;  %v3613_v52 = vld [vmem:[%s4743_s3 + $0x70] ss:$8 sps:$4 sm:$0xff]   ;;  %v3621_v56 = vld [vmem:[%s4743_s3 + $0x114] ss:$8 sps:$4 sm:$0xff]  }
 0x180   :  { %v849_v5 = vsel %vm309_vm3, %v847_v53, %v848_v61  ;;  %v4117_v6 = vsel %vm585_vm4, %v1177_v57, %v1178_v62  ;;  %v4120_v7 = vsel %vm1370_vm5, %v1371_v60, %v1372_v63  ;;  %v4123_v8 = vsel %vm1564_vm6, %v1565_v40, %v1566_v0  ;;  %v3618_v53 = vld [vmem:[%s4743_s3 + $0x104] ss:$8 sps:$4 sm:$0xff]   ;;  %v3619_v57 = vld [vmem:[%s4743_s3 + $0x110] ss:$8 sps:$4 sm:$0xff]   ;;  %v3622_v59 = vld [vmem:[%s4743_s3 + $0x120] ss:$8 sps:$4 sm:$0xff]  }
 0x181   :  { %v787_v11 = vsel %vm309_vm3, %v784_v43, %v786_v1  ;;  %v788_v12 = vrot.slane %v765_v3, 1  ;;  %971 = vmatmul.mubr.bf16.vlgmr.msra.gmra.mrb[0].mxu1 %v849_v5  ;;  %v3606_v43 = vld [vmem:[%s4743_s3 + $0x44] ss:$8 sps:$4 sm:$0xff]   ;;  %v3625_v60 = vld [vmem:[%s4743_s3 + $0x130] ss:$8 sps:$4 sm:$0xff]  }
 0x182   :  { %v803_v9 = vmax.f32 %v763_v32, %v787_v11  ;;  %1090 = vmatpush1.bf16.msra.mxu1 %v3592_v41  ;;  %980 = vmatprep.mubr.bf16.mxu1 %v3768_v2  ;;  %v3630_v40 = vld [vmem:[%s4743_s3 + $0x144] ss:$8 sps:$4 sm:$0xff]   ;;  %v3631_v41 = vld [vmem:[%s4743_s3 + $0x150] ss:$8 sps:$4 sm:$0xff]   ;;  %v3645_v5 = vld [vmem:[%s4743_s3 + $0x194] ss:$8 sps:$4 sm:$0xff]  }
 0x183   :  { %v789_v14 = vsel %vm309_vm3, %v786_v1, %v788_v12  ;;  %v805_v13 = vmax.f32 %v765_v3, %v788_v12  ;;  %1091 = vmatprep.subr.bf16.mxu1 %v3597_v4  ;;  %v3637_v1 = vld [vmem:[%s4743_s3 + $0x170] ss:$8 sps:$4 sm:$0xff]   ;;  %v3642_v3 = vld [vmem:[%s4743_s3 + $0x184] ss:$8 sps:$4 sm:$0xff]   ;;  %v3640_v4 = vld [vmem:[%s4743_s3 + $0x180] ss:$8 sps:$4 sm:$0xff]  }
 0x184   :  { %v4134_v16 = vpack.c.bf16 %v803_v9, %v802_v55  ;;  %v804_v17 = vmax.f32 %v764_v58, %v789_v14  ;;  %v3616_v55 = vld [vmem:[%s4743_s3 + $0x100] ss:$8 sps:$4 sm:$0xff]   ;;  %v3624_v58 = vld [vmem:[%s4743_s3 + $0x124] ss:$8 sps:$4 sm:$0xff]   ;;  %v3643_v11 = vld [vmem:[%s4743_s3 + $0x190] ss:$8 sps:$4 sm:$0xff]  }
 0x185   :  { %v3648_v12 = vld [vmem:[%s4743_s3 + $0x1a4] ss:$8 sps:$4 sm:$0xff]   ;;  %v3646_v9 = vld [vmem:[%s4743_s3 + $0x1a0] ss:$8 sps:$4 sm:$0xff]  }
 0x186   :  { %v4136_v18 = vpack.c.bf16 %v805_v13, %v804_v17  ;;  %1092 = vmatpush1.bf16.msra.mxu1 %v3595_v10  ;;  %v850_v19 = vrot.slane %v4134_v16, 1  ;;  %v1180_v21 = vrot.slane %v4134_v16, 2  ;;  %v1374_v22 = vrot.slane %v4134_v16, 3  ;;  %v3649_v10 = vld [vmem:[%s4743_s3 + $0x1b0] ss:$8 sps:$4 sm:$0xff]  }
 0x187   :  { %1093 = vmatprep.subr.bf16.mxu1 %v3600_v15  ;;  %v1568_v24 = vrot.slane %v4134_v16, 4  ;;  %v3654_v14 = vld [vmem:[%s4743_s3 + $0x1c4] ss:$8 sps:$4 sm:$0xff]   ;;  %v3652_v13 = vld [vmem:[%s4743_s3 + $0x1c0] ss:$8 sps:$4 sm:$0xff]  }
 0x188   :  { %v851_v25 = vsel %vm309_vm3, %v848_v61, %v850_v19  ;;  %v852_v27 = vrot.slane %v4136_v18, 1  ;;  %v4151_v28 = vsel %vm585_vm4, %v1178_v62, %v1180_v21  ;;  %v1182_v29 = vrot.slane %v4136_v18, 2  ;;  %v3628_v61 = vld [vmem:[%s4743_s3 + $0x140] ss:$8 sps:$4 sm:$0xff]   ;;  %v3636_v62 = vld [vmem:[%s4743_s3 + $0x164] ss:$8 sps:$4 sm:$0xff]  }
 0x189   :  { %981 = vmatmul.mubr.bf16.gmra.mrb[4].mxu1 %v851_v25  ;;  %v4155_v30 = vsel %vm1370_vm5, %v1372_v63, %v1374_v22  ;;  %v1376_v31 = vrot.slane %v4136_v18, 3  ;;  %v4159_v32 = vsel %vm1564_vm6, %v1566_v0, %v1568_v24  ;;  %v1570_v33 = vrot.slane %v4136_v18, 4  ;;  %v3634_v63 = vld [vmem:[%s4743_s3 + $0x160] ss:$8 sps:$4 sm:$0xff]   ;;  %v3639_v0 = vld [vmem:[%s4743_s3 + $0x174] ss:$8 sps:$4 sm:$0xff]  }
 0x18a   :  { %1094 = vmatpush1.bf16.msra.mxu1 %v3598_v20  ;;  %990 = vmatprep.mubr.bf16.mxu1 %v3768_v2  ;;  %v853_v38 = vsel %vm309_vm3, %v850_v19, %v852_v27  ;;  %v4170_v42 = vsel %vm585_vm4, %v1180_v21, %v1182_v29  ;;  %v3657_v15 = vld [vmem:[%s4743_s3 + $0x1d4] ss:$8 sps:$4 sm:$0xff]   ;;  %v3660_v17 = vld [vmem:[%s4743_s3 + $0x1e4] ss:$8 sps:$4 sm:$0xff]   ;;  %v3658_v19 = vld [vmem:[%s4743_s3 + $0x1e0] ss:$8 sps:$4 sm:$0xff]  }
 0x18b   :  { %1095 = vmatprep.subr.bf16.mxu1 %v3603_v23  ;;  %v4178_v44 = vsel %vm1370_vm5, %v1374_v22, %v1376_v31  ;;  %v4183_v45 = vsel %vm1564_vm6, %v1568_v24, %v1570_v33  ;;  %v3663_v20 = vld [vmem:[%s4743_s3 + $0x1f4] ss:$8 sps:$4 sm:$0xff]   ;;  %v3661_v21 = vld [vmem:[%s4743_s3 + $0x1f0] ss:$8 sps:$4 sm:$0xff]   ;;  %v3666_v22 = vld [vmem:[%s4743_s3 + $0x204] ss:$8 sps:$4 sm:$0xff]  }
 0x18c   :  { %v3664_v23 = vld [vmem:[%s4743_s3 + $0x200] ss:$8 sps:$4 sm:$0xff]   ;;  %v3669_v24 = vld [vmem:[%s4743_s3 + $0x214] ss:$8 sps:$4 sm:$0xff]   ;;  %v3667_v25 = vld [vmem:[%s4743_s3 + $0x210] ss:$8 sps:$4 sm:$0xff]  }
 0x18e   :  { %1096 = vmatpush1.bf16.msra.mxu1 %v3601_v34  ;;  %v3678_v34 = vld [vmem:[%s4743_s3 + $0x244] ss:$8 sps:$4 sm:$0xff]  }
 0x18f   :  { %1097 = vmatprep.subr.bf16.mxu1 %v3606_v43  ;;  %v3684_v43 = vld [vmem:[%s4743_s3 + $0x264] ss:$8 sps:$4 sm:$0xff]  }
 0x191   :  { %991 = vmatmul.mubr.bf16.gmra.mrb[8].mxu1 %v853_v38  ;;  %v3676_v38 = vld [vmem:[%s4743_s3 + $0x240] ss:$8 sps:$4 sm:$0xff]  }
 0x192   :  { %1098 = vmatpush1.bf16.msra.mxu1 %v3604_v46  ;;  %1000 = vmatprep.mubr.bf16.mxu1 %v3768_v2  ;;  %v3682_v46 = vld [vmem:[%s4743_s3 + $0x260] ss:$8 sps:$4 sm:$0xff]  }
 0x193   :  { %1099 = vmatprep.subr.bf16.mxu1 %v3609_v47  ;;  %v3685_v47 = vld [vmem:[%s4743_s3 + $0x270] ss:$8 sps:$4 sm:$0xff]  }
 0x196   :  { %1100 = vmatpush1.bf16.msra.mxu1 %v3607_v48  ;;  %v3769_v48 = vmov 0.0  }
 0x197   :  { %1101 = vmatprep.subr.bf16.mxu1 %v3612_v49  ;;  %3222 = vmatprep.subr.bf16.mxu0 %v3769_v48  ;;  %v3695_v49 = vld [vmem:[%s4745_s5 + $0x50] sm:$0xff]  }
 0x198   :  { %3238 = vmatprep.mubr.msk.bf16.mxu0 %vm3770_vm7, %v3769_v48 }
 0x199   :  { %1001 = vmatmul.mubr.bf16.gmra.mrb[12].mxu1 %v852_v27  ;;  %v3672_v27 = vld [vmem:[%s4743_s3 + $0x224] ss:$8 sps:$4 sm:$0xff]  }
 0x19a   :  { %1102 = vmatpush1.bf16.msra.mxu1 %v3610_v50  ;;  %1121 = vmatprep.mubr.bf16.mxu1 %v3768_v2  ;;  %v3696_v50 = vld [vmem:[%s4745_s5 + $0x28] sm:$0xff]  }
 0x19b   :  { %1103 = vmatprep.subr.bf16.mxu1 %v3615_v51  ;;  %v3697_v51 = vld [vmem:[%s4745_s5 + $0x58] sm:$0xff]  }
 0x19e   :  { %1104 = vmatpush1.bf16.msra.mxu1 %v3613_v52  ;;  %v3698_v52 = vld [vmem:[%s4745_s5 + $0x30] sm:$0xff]  }
 0x19f   :  { %1268 = vmatprep.subr.bf16.mxu1 %v3618_v53  ;;  %v3699_v53 = vld [vmem:[%s4745_s5 + $0x60] sm:$0xff]  }
 0x1a1   :  { %1122 = vmatmul.mubr.bf16.vlgmr.msra.gmra.mrb[0].mxu1 %v4091_v26  ;;  %v3627_v26 = vld [vmem:[%s4743_s3 + $0x134] ss:$8 sps:$4 sm:$0xff]  }
 0x1a2   :  { %1269 = vmatpush1.bf16.msra.mxu1 %v3616_v55  ;;  %1131 = vmatprep.mubr.bf16.mxu1 %v3768_v2  ;;  %v3700_v55 = vld [vmem:[%s4745_s5 + $0x38] sm:$0xff]  }
 0x1a3   :  { %1270 = vmatprep.subr.bf16.mxu1 %v3621_v56  ;;  %v3701_v56 = vld [vmem:[%s4745_s5 + $0x68] sm:$0xff]  }
 0x1a6   :  { %1271 = vmatpush1.bf16.msra.mxu1 %v3619_v57 }
 0x1a7   :  { %1272 = vmatprep.subr.bf16.mxu1 %v3624_v58 }
 0x1a9   :  { %1132 = vmatmul.mubr.bf16.gmra.mrb[4].mxu1 %v4100_v54  ;;  %v3633_v54 = vld [vmem:[%s4743_s3 + $0x154] ss:$8 sps:$4 sm:$0xff]  }
 0x1aa   :  { %1273 = vmatpush1.bf16.msra.mxu1 %v3622_v59  ;;  %1141 = vmatprep.mubr.bf16.mxu1 %v3768_v2  ;;  %v3703_v59 = vld [vmem:[%s4745_s5 + $0x70] sm:$0xff]  }
 0x1ab   :  { %1274 = vmatprep.subr.bf16.mxu1 %v3627_v26 }
 0x1ae   :  { %1275 = vmatpush1.bf16.msra.mxu1 %v3625_v60 }
 0x1af   :  { %1276 = vmatprep.subr.bf16.mxu1 %v3630_v40  ;;  %v3705_v40 = vld [vmem:[%s4745_s5 + $0x78] sm:$0xff]  }
 0x1b1   :  { %1142 = vmatmul.mubr.bf16.gmra.mrb[8].mxu1 %v4134_v16  ;;  %v3655_v16 = vld [vmem:[%s4743_s3 + $0x1d0] ss:$8 sps:$4 sm:$0xff]  }
 0x1b2   :  { %1277 = vmatpush1.bf16.msra.mxu1 %v3628_v61  ;;  %1151 = vmatprep.mubr.bf16.mxu1 %v3768_v2 }
 0x1b3   :  { %1278 = vmatprep.subr.bf16.mxu1 %v3633_v54 }
 0x1b6   :  { %1279 = vmatpush1.bf16.msra.mxu1 %v3631_v41 }
 0x1b7   :  { %1280 = vmatprep.subr.bf16.mxu1 %v3636_v62 }
 0x1b9   :  { %1152 = vmatmul.mubr.bf16.gmra.mrb[16].mxu1 %v4136_v18  ;;  %v3691_v18 = vld [vmem:[%s4745_s5 + $0x40] sm:$0xff]  }
 0x1ba   :  { %1281 = vmatpush1.bf16.msra.mxu1 %v3634_v63  ;;  %1300 = vmatprep.mubr.bf16.mxu1 %v3768_v2 }
 0x1bb   :  { %1282 = vmatprep.subr.bf16.mxu1 %v3639_v0  ;;  %3223 = vmatpush3.bf16.msra.mxu0 %v3691_v18 }
 0x1bc   :  { %3224 = vmatprep.subr.bf16.mxu0 %v3769_v48 }
 0x1be   :  { %1283 = vmatpush1.bf16.msra.mxu1 %v3637_v1 }
 0x1bf   :  { %1462 = vmatprep.subr.bf16.mxu1 %v3642_v3 }
 0x1c1   :  { %1301 = vmatmul.mubr.bf16.vlgmr.msra.gmra.mrb[0].mxu1 %v4117_v6  ;;  %v3651_v6 = vld [vmem:[%s4743_s3 + $0x1b4] ss:$8 sps:$4 sm:$0xff]  }
 0x1c2   :  { %1463 = vmatpush1.bf16.msra.mxu1 %v3640_v4  ;;  %1310 = vmatprep.mubr.bf16.mxu1 %v3768_v2 }
 0x1c3   :  { %1464 = vmatprep.subr.bf16.mxu1 %v3645_v5 }
 0x1c6   :  { %1465 = vmatpush1.bf16.msra.mxu1 %v3643_v11 }
 0x1c7   :  { %1466 = vmatprep.subr.bf16.mxu1 %v3648_v12 }
 0x1c9   :  { %1311 = vmatmul.mubr.bf16.gmra.mrb[4].mxu1 %v4151_v28  ;;  %v3670_v28 = vld [vmem:[%s4743_s3 + $0x220] ss:$8 sps:$4 sm:$0xff]  }
 0x1ca   :  { %1467 = vmatpush1.bf16.msra.mxu1 %v3646_v9  ;;  %1320 = vmatprep.mubr.bf16.mxu1 %v3768_v2 }
 0x1cb   :  { %1468 = vmatprep.subr.bf16.mxu1 %v3651_v6 }
 0x1ce   :  { %1469 = vmatpush1.bf16.msra.mxu1 %v3649_v10 }
 0x1cf   :  { %1470 = vmatprep.subr.bf16.mxu1 %v3654_v14 }
 0x1d1   :  { %1321 = vmatmul.mubr.bf16.gmra.mrb[8].mxu1 %v4170_v42  ;;  %v3679_v42 = vld [vmem:[%s4743_s3 + $0x250] ss:$8 sps:$4 sm:$0xff]  }
 0x1d2   :  { %1471 = vmatpush1.bf16.msra.mxu1 %v3652_v13  ;;  %1330 = vmatprep.mubr.bf16.mxu1 %v3768_v2 }
 0x1d3   :  { %1472 = vmatprep.subr.bf16.mxu1 %v3657_v15  ;;  %v1741_v15 = vld [vmem:[%s4744_s4] sm:$0x3] }
 0x1d6   :  { %1473 = vmatpush1.bf16.msra.mxu1 %v3655_v16 }
 0x1d7   :  { %1474 = vmatprep.subr.bf16.mxu1 %v3660_v17  ;;  %v4465_v17 = vrot.slane %v1741_v15, %v718_v37 }
 0x1d9   :  { %1331 = vmatmul.mubr.bf16.gmra.mrb[20].mxu1 %v1182_v29  ;;  %v3673_v29 = vld [vmem:[%s4743_s3 + $0x230] ss:$8 sps:$4 sm:$0xff]  }
 0x1da   :  { %1475 = vmatpush1.bf16.msra.mxu1 %v3658_v19  ;;  %1494 = vmatprep.mubr.bf16.mxu1 %v3768_v2  ;;  %v4469_v19 = vrot.slane %v1741_v15, %v722_v39 }
 0x1db   :  { %1476 = vmatprep.subr.bf16.mxu1 %v3663_v20 }
 0x1de   :  { %1477 = vmatpush1.bf16.msra.mxu1 %v3661_v21 }
 0x1df   :  { %1656 = vmatprep.subr.bf16.mxu1 %v3666_v22 }
 0x1e1   :  { %1495 = vmatmul.mubr.bf16.vlgmr.msra.gmra.mrb[0].mxu1 %v4120_v7  ;;  %v3675_v7 = vld [vmem:[%s4743_s3 + $0x234] ss:$8 sps:$4 sm:$0xff]  }
 0x1e2   :  { %1657 = vmatpush1.bf16.msra.mxu1 %v3664_v23  ;;  %1504 = vmatprep.mubr.bf16.mxu1 %v3768_v2 }
 0x1e3   :  { %1658 = vmatprep.subr.bf16.mxu1 %v3669_v24 }
 0x1e6   :  { %1659 = vmatpush1.bf16.msra.mxu1 %v3667_v25 }
 0x1e7   :  { %1660 = vmatprep.subr.bf16.mxu1 %v3672_v27 }
 0x1e9   :  { %1505 = vmatmul.mubr.bf16.gmra.mrb[4].mxu1 %v4155_v30  ;;  %v3681_v30 = vld [vmem:[%s4743_s3 + $0x254] ss:$8 sps:$4 sm:$0xff]  }
 0x1ea   :  { %1661 = vmatpush1.bf16.msra.mxu1 %v3670_v28  ;;  %1514 = vmatprep.mubr.bf16.mxu1 %v3768_v2 }
 0x1eb   :  { %1662 = vmatprep.subr.bf16.mxu1 %v3675_v7 }
 0x1ee   :  { %1663 = vmatpush1.bf16.msra.mxu1 %v3673_v29 }
 0x1ef   :  { %1664 = vmatprep.subr.bf16.mxu1 %v3678_v34 }
 0x1f1   :  { %1515 = vmatmul.mubr.bf16.gmra.mrb[8].mxu1 %v4178_v44  ;;  %v3687_v44 = vld [vmem:[%s4743_s3 + $0x274] ss:$8 sps:$4 sm:$0xff]  }
 0x1f2   :  { %1665 = vmatpush1.bf16.msra.mxu1 %v3676_v38  ;;  %1524 = vmatprep.mubr.bf16.mxu1 %v3768_v2 }
 0x1f3   :  { %1666 = vmatprep.subr.bf16.mxu1 %v3681_v30 }
 0x1f6   :  { %1667 = vmatpush1.bf16.msra.mxu1 %v3679_v42 }
 0x1f7   :  { %1668 = vmatprep.subr.bf16.mxu1 %v3684_v43 }
 0x1f9   :  { %1525 = vmatmul.mubr.bf16.gmra.mrb[24].mxu1 %v1376_v31  ;;  %v3688_v31 = vld [vmem:[%s4745_s5] sm:$0xff]  }
 0x1fa   :  { %1669 = vmatpush1.bf16.msra.mxu1 %v3682_v46  ;;  %1688 = vmatprep.mubr.bf16.mxu1 %v3768_v2 }
 0x1fb   :  { %1670 = vmatprep.subr.bf16.mxu1 %v3687_v44 }
 0x1fe   :  { %1671 = vmatpush1.bf16.msra.mxu1 %v3685_v47 }
 0x1ff   :  { %3250 = vmatprep.subr.bf16.mxu1 %v3769_v48 }
 0x201   :  { %1689 = vmatmul.mubr.bf16.vlgmr.msra.gmra.mrb[0].mxu1 %v4123_v8  ;;  %v3689_v8 = vld [vmem:[%s4745_s5 + $0x8] sm:$0xff]  }
 0x202   :  { %1698 = vmatprep.mubr.bf16.mxu1 %v3768_v2  ;;  %3251 = vmatpush3.bf16.msra.mxu1 %v3688_v31 }
 0x203   :  { %3252 = vmatprep.subr.bf16.mxu1 %v3769_v48 }
 0x206   :  { %3253 = vmatpush3.bf16.msra.mxu1 %v3689_v8 }
 0x207   :  { %3254 = vmatprep.subr.bf16.mxu1 %v3769_v48 }
 0x209   :  { %1699 = vmatmul.mubr.bf16.gmra.mrb[4].mxu1 %v4159_v32  ;;  %v3692_v32 = vld [vmem:[%s4745_s5 + $0x18] sm:$0xff]  }
 0x20a   :  { %1708 = vmatprep.mubr.bf16.mxu1 %v3768_v2 }
 0x211   :  { %1709 = vmatmul.mubr.bf16.gmra.mrb[8].mxu1 %v4183_v45  ;;  %v3694_v45 = vld [vmem:[%s4745_s5 + $0x20] sm:$0xff]  }
 0x212   :  { %1718 = vmatprep.mubr.bf16.mxu1 %v3768_v2  ;;  %v3690_v2 = vld [vmem:[%s4745_s5 + $0x10] sm:$0xff]  }
 0x213   :  { %3255 = vmatpush3.bf16.msra.mxu1 %v3690_v2 }
 0x214   :  { %3256 = vmatprep.subr.bf16.mxu1 %v3769_v48 }
 0x217   :  { %3257 = vmatpush3.bf16.msra.mxu1 %v3692_v32 }
 0x218   :  { %3258 = vmatprep.subr.bf16.mxu1 %v3769_v48 }
 0x219   :  { %1719 = vmatmul.mubr.bf16.gmra.mrb[28].mxu1 %v1570_v33  ;;  %v3693_v33 = vld [vmem:[%s4745_s5 + $0x48] sm:$0xff]  }
 0x21a   :  { %3225 = vmatpush3.bf16.msra.mxu0 %v3693_v33  ;;  %3266 = vmatprep.mubr.msk.bf16.mxu1 %vm3770_vm7, %v3769_v48 }
 0x21b   :  { %3259 = vmatpush3.bf16.msra.mxu1 %v3694_v45  ;;  %3226 = vmatprep.subr.bf16.mxu0 %v3769_v48 }
 0x21c   :  { %3260 = vmatprep.subr.bf16.mxu1 %v3769_v48 }
 0x21e   :  { %3227 = vmatpush3.bf16.msra.mxu0 %v3695_v49 }
 0x21f   :  { %3261 = vmatpush3.bf16.msra.mxu1 %v3696_v50  ;;  %3228 = vmatprep.subr.bf16.mxu0 %v3769_v48 }
 0x220   :  { %3262 = vmatprep.subr.bf16.mxu1 %v3769_v48 }
 0x222   :  { %3229 = vmatpush3.bf16.msra.mxu0 %v3697_v51 }
 0x223   :  { %3263 = vmatpush3.bf16.msra.mxu1 %v3698_v52  ;;  %3230 = vmatprep.subr.bf16.mxu0 %v3769_v48 }
 0x224   :  { %3264 = vmatprep.subr.bf16.mxu1 %v3769_v48 }
 0x226   :  { %3231 = vmatpush3.bf16.msra.mxu0 %v3699_v53 }
 0x227   :  { %3265 = vmatpush3.bf16.msra.mxu1 %v3700_v55  ;;  %3232 = vmatprep.subr.bf16.mxu0 %v3769_v48 }
 0x228   :  { %3306 = vmatprep.subr.bf16.mxu1 %v3769_v48 }
 0x22a   :  { %3233 = vmatpush3.bf16.msra.mxu0 %v3701_v56 }
 0x22b   :  { %3234 = vmatprep.subr.bf16.mxu0 %v3769_v48 }
 0x22e   :  { %3235 = vmatpush3.bf16.msra.mxu0 %v3703_v59 }
 0x22f   :  { %3236 = vmatprep.subr.bf16.mxu0 %v3769_v48 }
 0x232   :  { %3237 = vmatpush3.bf16.msra.mxu0 %v3705_v40 }
 0x233   :  { %3278 = vmatprep.subr.bf16.mxu0 %v3769_v48 }
 0x26c   :  { %v1002_v57 = vpop.f32.mrb[12].mxu1 }
 0x26d   :  { %v1004_v58 = vpop.f32.mrb[13].mxu1 }
 0x26e   :  { %v1006_v26 = vpop.f32.mrb[14].mxu1 }
 0x26f   :  { %v1007_v60 = vpop.f32.mrb[15].mxu1 }
 0x28c   :  { %v1153_v61 = vpop.f32.mrb[16].mxu1 }
 0x28d   :  { %v1154_v54 = vadd.f32 %v1153_v61, %v1002_v57  ;;  %v1155_v41 = vpop.f32.mrb[17].mxu1 }
 0x28e   :  { %v1156_v62 = vadd.f32 %v1155_v41, %v1004_v58  ;;  %v1157_v63 = vpop.f32.mrb[18].mxu1 }
 0x28f   :  { %v1158_v0 = vpop.f32.mrb[19].mxu1 }
 0x2ac   :  { %v1332_v1 = vpop.f32.mrb[20].mxu1 }
 0x2ad   :  { %v1351_v3 = vadd.f32 %v1332_v1, %v1154_v54  ;;  %v1334_v4 = vpop.f32.mrb[21].mxu1 }
 0x2ae   :  { %v1352_v5 = vadd.f32 %v1334_v4, %v1156_v62  ;;  %v1336_v11 = vpop.f32.mrb[22].mxu1 }
 0x2af   :  { %v1337_v12 = vpop.f32.mrb[23].mxu1 }
 0x2cc   :  { %v1526_v9 = vpop.f32.mrb[24].mxu1 }
 0x2cd   :  { %v4456_v6 = vadd.f32 %v1526_v9, %v1351_v3  ;;  %v1528_v10 = vpop.f32.mrb[25].mxu1  ;;  %v3702_v3 = vld [vmem:[%s4745_s5 + $0xc0] sm:$0xff]  }
 0x2ce   :  { %v4458_v14 = vadd.f32 %v1528_v10, %v1352_v5  ;;  %v1530_v13 = vpop.f32.mrb[26].mxu1 }
 0x2cf   :  { %v1531_v16 = vpop.f32.mrb[27].mxu1 }
 0x2d0   :  { %v3704_v16 = vld [vmem:[%s4745_s5 + $0xc8] sm:$0xff]  }
 0x2d4   :  { %v1690_v20 = vpop.f32.mrb[0].mxu1 }
 0x2d5   :  { %v1753_v21 = vadd.f32 %v4465_v17, %v1690_v20  ;;  %v1692_v22 = vpop.f32.mrb[1].mxu1 }
 0x2d6   :  { %v1754_v23 = vadd.f32 %v4469_v19, %v1692_v22  ;;  %v1694_v24 = vpop.f32.mrb[2].mxu1 }
 0x2d7   :  { %v1767_v25 = vmax.f32 %v1753_v21, 0.0  ;;  %v1755_v27 = vadd.f32 %v4465_v17, %v1694_v24  ;;  %v1696_v28 = vpop.f32.mrb[3].mxu1 }
 0x2d8   :  { %v1768_v7 = vmax.f32 %v1754_v23, 0.0  ;;  %v1756_v29 = vadd.f32 %v4469_v19, %v1696_v28 }
 0x2d9   :  { %v1769_v37 = vmax.f32 %v1755_v27, 0.0 }
 0x2da   :  { %v1781_v34 = vmax.f32 %v1767_v25, %v1768_v7  ;;  %v1770_v38 = vmax.f32 %v1756_v29, 0.0 }
 0x2dc   :  { %v1782_v30 = vmax.f32 %v1769_v37, %v1770_v38  ;;  %v1700_v39 = vpop.f32.mrb[4].mxu1  ;;  %v1796_v46 = vrot.slane %v1781_v34, 2 }
 0x2dd   :  { %v1757_v42 = vadd.f32 %v4465_v17, %v1700_v39  ;;  %v1702_v43 = vpop.f32.mrb[5].mxu1 }
 0x2de   :  { %v1797_v44 = vrot.slane %v1782_v30, 2  ;;  %v1758_v47 = vadd.f32 %v4469_v19, %v1702_v43  ;;  %v1704_v31 = vpop.f32.mrb[6].mxu1  ;;  %v3708_v43 = vld [vmem:[%s4745_s5 + $0xd8] sm:$0xff]  }
 0x2df   :  { %v1771_v8 = vmax.f32 %v1757_v42, 0.0  ;;  %v1759_v2 = vadd.f32 %v4465_v17, %v1704_v31  ;;  %v1706_v18 = vpop.f32.mrb[7].mxu1 }
 0x2e0   :  { %v1798_v32 = vsel %vm585_vm4, %v1796_v46, %v1797_v44  ;;  %v1772_v33 = vmax.f32 %v1758_v47, 0.0  ;;  %v1760_v45 = vadd.f32 %v4469_v19, %v1706_v18  ;;  %v3709_v47 = vld [vmem:[%s4745_s5 + $0x88] sm:$0xff]  }
 0x2e1   :  { %v1816_v49 = vmax.f32 %v1781_v34, %v1798_v32  ;;  %v1773_v50 = vmax.f32 %v1759_v2, 0.0 }
 0x2e2   :  { %v1783_v51 = vmax.f32 %v1771_v8, %v1772_v33  ;;  %v1774_v52 = vmax.f32 %v1760_v45, 0.0  ;;  %v3710_v8 = vld [vmem:[%s4745_s5 + $0xe0] sm:$0xff]   ;;  %v3711_v33 = vld [vmem:[%s4745_s5 + $0x90] sm:$0xff]   ;;  %v3712_v45 = vld [vmem:[%s4745_s5 + $0xe8] sm:$0xff]  }
 0x2e4   :  { %v1799_v53 = vrot.slane %v1783_v51, 2  ;;  %v1784_v55 = vmax.f32 %v1773_v50, %v1774_v52  ;;  %v1710_v56 = vpop.f32.mrb[8].mxu1  ;;  %v3714_v52 = vld [vmem:[%s4745_s5 + $0xf0] sm:$0xff]  }
 0x2e5   :  { %v1761_v57 = vadd.f32 %v4465_v17, %v1710_v56  ;;  %v1712_v58 = vpop.f32.mrb[9].mxu1 }
 0x2e6   :  { %v1800_v59 = vsel %vm585_vm4, %v1797_v44, %v1799_v53  ;;  %v1801_v26 = vrot.slane %v1784_v55, 2  ;;  %v1762_v60 = vadd.f32 %v4469_v19, %v1712_v58  ;;  %v1714_v40 = vpop.f32.mrb[10].mxu1 }
 0x2e7   :  { %v1817_v61 = vmax.f32 %v1782_v30, %v1800_v59  ;;  %v1775_v54 = vmax.f32 %v1761_v57, 0.0  ;;  %v1763_v41 = vadd.f32 %v4465_v17, %v1714_v40  ;;  %v1716_v62 = vpop.f32.mrb[11].mxu1  ;;  %v3717_v57 = vld [vmem:[%s4745_s5 + $0xa8] sm:$0xff]   ;;  %v3719_v40 = vld [vmem:[%s4745_s5 + $0xb8] sm:$0xff]  }
 0x2e8   :  { %v1802_v63 = vsel %vm585_vm4, %v1799_v53, %v1801_v26  ;;  %v1776_v0 = vmax.f32 %v1762_v60, 0.0  ;;  %v1764_v1 = vadd.f32 %v4469_v19, %v1716_v62  ;;  %v3715_v53 = vld [vmem:[%s4745_s5 + $0xa0] sm:$0xff]  }
 0x2e9   :  { %v1818_v4 = vmax.f32 %v1783_v51, %v1802_v63  ;;  %v1777_v5 = vmax.f32 %v1763_v41, 0.0  ;;  %v4489_v11 = vpack.c.bf16 %v1817_v61, %v1816_v49  ;;  %v3713_v51 = vld [vmem:[%s4745_s5 + $0x98] sm:$0xff]   ;;  %v3720_v62 = vld [vmem:[%s4745_s5 + $0x100] sm:$0xff]  }
 0x2ea   :  { %v1785_v12 = vmax.f32 %v1775_v54, %v1776_v0  ;;  %v1778_v9 = vmax.f32 %v1764_v1, 0.0  ;;  %v3721_v0 = vld [vmem:[%s4745_s5 + $0x108] sm:$0xff]  }
 0x2eb   :  { %3267 = vmatmul.mubr.bf16.vlgmr.msra.gmra.mrb[32].mxu1 %v4489_v11  ;;  %v2231_v58 = vrot.slane %v4489_v11, 6  ;;  %v2096_v41 = vrot.slane %v4489_v11, 4 }
 0x2ec   :  { %v1803_v10 = vrot.slane %v1785_v12, 2  ;;  %v1786_v13 = vmax.f32 %v1777_v5, %v1778_v9  ;;  %3307 = vmatpush3.bf16.msra.mxu1 %v3702_v3  ;;  %v1720_v15 = vpop.f32.mrb[28].mxu1  ;;  %3270 = vmatprep.mubr.msk.bf16.mxu1 %vm3770_vm7, %v3769_v48  ;;  %v3722_v3 = vld [vmem:[%s4745_s5 + $0x110] sm:$0xff]   ;;  %v3723_v5 = vld [vmem:[%s4745_s5 + $0x118] sm:$0xff]  }
 0x2ed   :  { %v1739_v20 = vadd.f32 %v1720_v15, %v4456_v6  ;;  %v1722_v21 = vpop.f32.mrb[29].mxu1  ;;  %3308 = vmatprep.subr.bf16.mxu1 %v3769_v48  ;;  %v3706_v6 = vld [vmem:[%s4745_s5 + $0xd0] sm:$0xff]   ;;  %v3771_v15 = vmov 0.0|0.0  }
 0x2ee   :  { %v1804_v22 = vsel %vm585_vm4, %v1801_v26, %v1803_v10  ;;  %v1805_v23 = vrot.slane %v1786_v13, 2  ;;  %v1740_v24 = vadd.f32 %v1722_v21, %v4458_v14  ;;  %v1724_v25 = vpop.f32.mrb[30].mxu1  ;;  %v3718_v26 = vld [vmem:[%s4745_s5 + $0xb0] sm:$0xff]  }
 0x2ef   :  { %v1819_v27 = vmax.f32 %v1784_v55, %v1804_v22  ;;  %v1765_v28 = vadd.f32 %v4465_v17, %v1739_v20  ;;  %v1725_v7 = vpop.f32.mrb[31].mxu1  ;;  %v1863_v17 = vrot.slane %v4489_v11, 2  ;;  %v3716_v55 = vld [vmem:[%s4745_s5 + $0xf8] sm:$0xff]   ;;  %v3724_v11 = vld [vmem:[%s4745_s5 + $0x120] sm:$0xff]   ;;  %v3726_v9 = vld [vmem:[%s4745_s5 + $0x130] sm:$0xff]  }
 0x2f0   :  { %v1806_v29 = vsel %vm585_vm4, %v1803_v10, %v1805_v23  ;;  %v1766_v37 = vadd.f32 %v4469_v19, %v1740_v24  ;;  %3309 = vmatpush3.bf16.msra.mxu1 %v3704_v16  ;;  %v3707_v19 = vld [vmem:[%s4745_s5 + $0x80] sm:$0xff]   ;;  %v3727_v10 = vld [vmem:[%s4745_s5 + $0x138] sm:$0xff]   ;;  %v3729_v20 = vld [vmem:[%s4747_s7 + $0x8] sm:$0xff]  }
 0x2f1   :  { %v1820_v34 = vmax.f32 %v1785_v12, %v1806_v29  ;;  %v1779_v38 = vmax.f32 %v1765_v28, 0.0  ;;  %3310 = vmatprep.subr.bf16.mxu1 %v3769_v48  ;;  %v4508_v30 = vpack.c.bf16 %v1819_v27, %v1818_v4  ;;  %v3725_v12 = vld [vmem:[%s4745_s5 + $0x128] sm:$0xff]   ;;  %v3728_v16 = vld [vmem:[%s4747_s7] sm:$0xff]   ;;  %v3730_v21 = vld [vmem:[%s4747_s7 + $0x10] sm:$0xff]  }
 0x2f2   :  { %v1780_v14 = vmax.f32 %v1766_v37, 0.0  ;;  %v3731_v22 = vld [vmem:[%s4747_s7 + $0x18] sm:$0xff]   ;;  %v3733_v24 = vld [vmem:[%s4747_s7 + $0x28] sm:$0xff]   ;;  %v3734_v25 = vld [vmem:[%s4747_s7 + $0x30] sm:$0xff]  }
 0x2f3   :  { %3271 = vmatmul.mubr.bf16.gmra.mrb[36].mxu1 %v4508_v30  ;;  %v1864_v39 = vrot.slane %v4508_v30, 2  ;;  %v2232_v56 = vrot.slane %v4508_v30, 6  ;;  %v2097_v61 = vrot.slane %v4508_v30, 4 }
 0x2f4   :  { %v1787_v42 = vmax.f32 %v1779_v38, %v1780_v14  ;;  %3311 = vmatpush3.bf16.msra.mxu1 %v3706_v6  ;;  %3274 = vmatprep.mubr.msk.bf16.mxu1 %vm3770_vm7, %v3769_v48 }
 0x2f5   :  { %v1865_v46 = vsel %vm585_vm4, %v1863_v17, %v1864_v39  ;;  %3312 = vmatprep.subr.bf16.mxu1 %v3769_v48  ;;  %v2233_v59 = vsel %vm2230_vm8, %v2231_v58, %v2232_v56  ;;  %v2098_v63 = vsel %vm1564_vm6, %v2096_v41, %v2097_v61 }
 0x2f6   :  { %v1807_v44 = vrot.slane %v1787_v42, 2  ;;  %3239 = vmatmul.mubr.bf16.vlgmr.msra.gmra.mrb[16].mxu0 %v1865_v46 }
 0x2f7   :  { %3279 = vmatpush3.bf16.msra.mxu0 %v3707_v19  ;;  %3242 = vmatprep.mubr.msk.bf16.mxu0 %vm3770_vm7, %v3769_v48 }
 0x2f8   :  { %v1808_v31 = vsel %vm585_vm4, %v1805_v23, %v1807_v44  ;;  %3313 = vmatpush3.bf16.msra.mxu1 %v3708_v43  ;;  %3280 = vmatprep.subr.bf16.mxu0 %v3769_v48  ;;  %v4533_v2 = vmax.f32 %v1787_v42, %v1807_v44  ;;  %v3732_v23 = vld [vmem:[%s4747_s7 + $0x20] sm:$0xff]  }
 0x2f9   :  { %v1821_v18 = vmax.f32 %v1786_v13, %v1808_v31  ;;  %3314 = vmatprep.subr.bf16.mxu1 %v3769_v48 }
 0x2fa   :  { %v1826_v13 = vpack.c.bf16 %v4533_v2, %v4533_v2 }
 0x2fb   :  { %3281 = vmatpush3.bf16.msra.mxu0 %v3709_v47  ;;  %v4536_v32 = vpack.c.bf16 %v1821_v18, %v1820_v34 }
 0x2fc   :  { %3315 = vmatpush3.bf16.msra.mxu1 %v3710_v8  ;;  %3282 = vmatprep.subr.bf16.mxu0 %v3769_v48 }
 0x2fd   :  { %3275 = vmatmul.mubr.bf16.gmra.mrb[40].mxu1 %v4536_v32  ;;  %3316 = vmatprep.subr.bf16.mxu1 %v3769_v48  ;;  %v1866_v49 = vrot.slane %v4536_v32, 2  ;;  %v2234_v60 = vrot.slane %v4536_v32, 6  ;;  %v2099_v1 = vrot.slane %v4536_v32, 4 }
 0x2fe   :  { %3322 = vmatprep.mubr.msk.bf16.mxu1 %vm3770_vm7, %v3769_v48 }
 0x2ff   :  { %3283 = vmatpush3.bf16.msra.mxu0 %v3711_v33  ;;  %v1867_v50 = vsel %vm585_vm4, %v1864_v39, %v1866_v49  ;;  %v2235_v54 = vsel %vm2230_vm8, %v2232_v56, %v2234_v60  ;;  %v2100_v4 = vsel %vm1564_vm6, %v2097_v61, %v2099_v1 }
 0x300   :  { %3317 = vmatpush3.bf16.msra.mxu1 %v3712_v45  ;;  %3243 = vmatmul.mubr.bf16.gmra.mrb[20].mxu0 %v1867_v50 }
 0x301   :  { %3284 = vmatprep.subr.bf16.mxu0 %v3769_v48  ;;  %3318 = vmatprep.subr.bf16.mxu1 %v3769_v48 }
 0x302   :  { %3246 = vmatprep.mubr.msk.bf16.mxu0 %vm3770_vm7, %v3769_v48 }
 0x303   :  { %3285 = vmatpush3.bf16.msra.mxu0 %v3713_v51 }
 0x304   :  { %3319 = vmatpush3.bf16.msra.mxu1 %v3714_v52  ;;  %3286 = vmatprep.subr.bf16.mxu0 %v3769_v48 }
 0x305   :  { %3320 = vmatprep.subr.bf16.mxu1 %v3769_v48 }
 0x307   :  { %3287 = vmatpush3.bf16.msra.mxu0 %v3715_v53 }
 0x308   :  { %3321 = vmatpush3.bf16.msra.mxu1 %v3716_v55  ;;  %3247 = vmatmul.mubr.bf16.gmra.mrb[24].mxu0 %v1866_v49 }
 0x309   :  { %3288 = vmatprep.subr.bf16.mxu0 %v3769_v48  ;;  %3294 = vmatprep.mubr.msk.bf16.mxu0 %vm3770_vm7, %v3769_v48 }
 0x30a   :  { %3415 = vmatprep.subr.bf16.mxu1 %v3771_v15 }
 0x30b   :  { %3289 = vmatpush3.bf16.msra.mxu0 %v3717_v57  ;;  %3323 = vmatmul.mubr.bf16.vlgmr.msra.gmra.mrb[44].mxu1 %v2233_v59 }
 0x30c   :  { %3290 = vmatprep.subr.bf16.mxu0 %v3769_v48  ;;  %3326 = vmatprep.mubr.msk.bf16.mxu1 %vm3770_vm7, %v3769_v48 }
 0x30f   :  { %3291 = vmatpush3.bf16.msra.mxu0 %v3718_v26 }
 0x310   :  { %3292 = vmatprep.subr.bf16.mxu0 %v3769_v48 }
 0x313   :  { %3293 = vmatpush3.bf16.msra.mxu0 %v3719_v40  ;;  %3327 = vmatmul.mubr.bf16.gmra.mrb[48].mxu1 %v2235_v54 }
 0x314   :  { %3334 = vmatprep.subr.bf16.mxu0 %v3769_v48  ;;  %3330 = vmatprep.mubr.msk.bf16.mxu1 %vm3770_vm7, %v3769_v48 }
 0x316   :  { %3295 = vmatmul.mubr.bf16.vlgmr.msra.gmra.mrb[28].mxu0 %v2098_v63 }
 0x317   :  { %3335 = vmatpush3.bf16.msra.mxu0 %v3720_v62  ;;  %3298 = vmatprep.mubr.msk.bf16.mxu0 %vm3770_vm7, %v3769_v48 }
 0x318   :  { %3336 = vmatprep.subr.bf16.mxu0 %v3769_v48 }
 0x31b   :  { %3331 = vmatmul.mubr.bf16.gmra.mrb[52].mxu1 %v2234_v60  ;;  %3337 = vmatpush3.bf16.msra.mxu0 %v3721_v0 }
 0x31c   :  { %3338 = vmatprep.subr.bf16.mxu0 %v3769_v48  ;;  %3372 = vmatprep.mubr.msk.f32.mxu1 %vm3770_vm7, %v3769_v48 }
 0x31e   :  { %3299 = vmatmul.mubr.bf16.gmra.mrb[32].mxu0 %v2100_v4 }
 0x31f   :  { %3339 = vmatpush3.bf16.msra.mxu0 %v3722_v3  ;;  %3302 = vmatprep.mubr.msk.bf16.mxu0 %vm3770_vm7, %v3769_v48 }
 0x320   :  { %3340 = vmatprep.subr.bf16.mxu0 %v3769_v48 }
 0x323   :  { %3341 = vmatpush3.bf16.msra.mxu0 %v3723_v5 }
 0x324   :  { %3342 = vmatprep.subr.bf16.mxu0 %v3769_v48 }
 0x326   :  { %3303 = vmatmul.mubr.bf16.gmra.mrb[36].mxu0 %v2099_v1 }
 0x327   :  { %3343 = vmatpush3.bf16.msra.mxu0 %v3724_v11  ;;  %3350 = vmatprep.mubr.msk.bf16.mxu0 %vm3770_vm7, %v3769_v48 }
 0x328   :  { %3344 = vmatprep.subr.bf16.mxu0 %v3769_v48 }
 0x32b   :  { %3345 = vmatpush3.bf16.msra.mxu0 %v3725_v12 }
 0x32c   :  { %3346 = vmatprep.subr.bf16.mxu0 %v3769_v48 }
 0x32f   :  { %3347 = vmatpush3.bf16.msra.mxu0 %v3726_v9 }
 0x330   :  { %3348 = vmatprep.subr.bf16.mxu0 %v3769_v48 }
 0x333   :  { %3349 = vmatpush3.bf16.msra.mxu0 %v3727_v10 }
 0x334   :  { %3375 = vmatprep.subr.bf16.mxu0 %v3769_v48 }
 0x336   :  { %3351 = vmatmul.mubr.bf16.vlgmr.msra.gmra.mrb[40].mxu0 %v4508_v30 }
 0x337   :  { %3354 = vmatprep.mubr.msk.bf16.mxu0 %vm3770_vm7, %v3769_v48  ;;  %3376 = vmatpush3.bf16.msra.mxu0 %v3728_v16 }
 0x338   :  { %3377 = vmatprep.subr.bf16.mxu0 %v3769_v48 }
 0x33b   :  { %3378 = vmatpush3.bf16.msra.mxu0 %v3729_v20 }
 0x33c   :  { %3379 = vmatprep.subr.bf16.mxu0 %v3769_v48 }
 0x33e   :  { %3355 = vmatmul.mubr.bf16.gmra.mrb[44].mxu0 %v4536_v32 }
 0x33f   :  { %3358 = vmatprep.mubr.msk.bf16.mxu0 %vm3770_vm7, %v3769_v48  ;;  %3380 = vmatpush3.bf16.msra.mxu0 %v3730_v21 }
 0x340   :  { %3381 = vmatprep.subr.bf16.mxu0 %v3769_v48 }
 0x343   :  { %3382 = vmatpush3.bf16.msra.mxu0 %v3731_v22 }
 0x344   :  { %3383 = vmatprep.subr.bf16.mxu0 %v3769_v48 }
 0x346   :  { %3359 = vmatmul.mubr.bf16.gmra.mrb[48].mxu0 %v1826_v13 }
 0x347   :  { %3391 = vmatprep.mubr.msk.bf16.mxu0 %vm3770_vm7, %v3769_v48  ;;  %3384 = vmatpush3.bf16.msra.mxu0 %v3732_v23 }
 0x348   :  { %3385 = vmatprep.subr.bf16.mxu0 %v3769_v48 }
 0x34b   :  { %3386 = vmatpush3.bf16.msra.mxu0 %v3733_v24 }
 0x34c   :  { %3387 = vmatprep.subr.bf16.mxu0 %v3769_v48 }
 0x34f   :  { %3388 = vmatpush3.bf16.msra.mxu0 %v3734_v25 }
 0x350   :  { %3389 = vmatprep.subr.bf16.mxu0 %v3769_v48 }
 0x3be   :  { %v2057_v27 = vpop.f32.mrb[32].mxu1 }
 0x3bf   :  { %v3268_v28 = vpop.f32.mrb[33].mxu1 }
 0x3c0   :  { %v2060_v7 = vpop.f32.mrb[34].mxu1 }
 0x3c1   :  { %v3269_v29 = vpop.f32.mrb[35].mxu1 }
 0x3c6   :  { %v2065_v37 = vpop.f32.mrb[36].mxu1 }
 0x3c7   :  { %v3272_v6 = vpop.f32.mrb[37].mxu1 }
 0x3c8   :  { %v2068_v34 = vpop.f32.mrb[38].mxu1 }
 0x3c9   :  { %v1953_v38 = vpop.f32.mrb[16].mxu0  ;;  %v3273_v30 = vpop.f32.mrb[39].mxu1 }
 0x3ca   :  { %v2058_v14 = vadd.f32 %v2057_v27, %v1953_v38  ;;  %v3240_v17 = vpop.f32.mrb[17].mxu0 }
 0x3cb   :  { %v1956_v39 = vpop.f32.mrb[18].mxu0 }
 0x3cc   :  { %v2061_v19 = vadd.f32 %v2060_v7, %v1956_v39  ;;  %v3241_v42 = vpop.f32.mrb[19].mxu0 }
 0x3d0   :  { %v2073_v43 = vpop.f32.mrb[40].mxu1 }
 0x3d1   :  { %v3276_v46 = vpop.f32.mrb[41].mxu1 }
 0x3d2   :  { %v2076_v44 = vpop.f32.mrb[42].mxu1 }
 0x3d3   :  { %v1961_v47 = vpop.f32.mrb[20].mxu0  ;;  %v3277_v31 = vpop.f32.mrb[43].mxu1 }
 0x3d4   :  { %v2066_v8 = vadd.f32 %v2065_v37, %v1961_v47  ;;  %v3244_v2 = vpop.f32.mrb[21].mxu0  ;;  %v3121_v37 = vld [vmem:[%s4746_s6] ss:$0 sm:$0xff] }
 0x3d5   :  { %v1964_v18 = vpop.f32.mrb[22].mxu0 }
 0x3d6   :  { %v2069_v32 = vadd.f32 %v2068_v34, %v1964_v18  ;;  %v3245_v33 = vpop.f32.mrb[23].mxu0 }
 0x3d7   :  { %v2494_v33 = vand.u32 127, %v716_v35  ;;  %v3735_v35 = vld [vmem:[%s4747_s7 + $0x38] sm:$0xff]  }
 0x3d8   :  { %3390 = vmatpush3.bf16.msra.mxu0 %v3735_v35 }
 0x3db   :  { %v1969_v45 = vpop.f32.mrb[24].mxu0 }
 0x3dc   :  { %v2074_v49 = vadd.f32 %v2073_v43, %v1969_v45  ;;  %v3248_v50 = vpop.f32.mrb[25].mxu0  ;;  %v2495_v45 = vmul.u32 32, %v4061_v36  ;;  %v3736_v36 = vld [vmem:[%s4749_s9] sm:$0xff]  }
 0x3dd   :  { %v1972_v51 = vpop.f32.mrb[26].mxu0 }
 0x3de   :  { %v2321_v52 = vpop.f32.mrb[44].mxu1  ;;  %v3249_v53 = vpop.f32.mrb[27].mxu0  ;;  %vm2496_vm9 = vcmp.eq.s32.totalorder %v2494_v33, %v2495_v45 }
 0x3df   :  { %v3324_v55 = vpop.f32.mrb[45].mxu1 }
 0x3e0   :  { %v2324_v56 = vpop.f32.mrb[46].mxu1 }
 0x3e1   :  { %v3325_v57 = vpop.f32.mrb[47].mxu1 }
 0x3e6   :  { %v2329_v58 = vpop.f32.mrb[48].mxu1 }
 0x3e7   :  { %v3328_v59 = vpop.f32.mrb[49].mxu1 }
 0x3e8   :  { %v2332_v26 = vpop.f32.mrb[50].mxu1  ;;  %v3122_v59 = vsel %vm2496_vm9, 1.0, %v3769_v48 }
 0x3e9   :  { %v2186_v60 = vpop.f32.mrb[28].mxu0  ;;  %v3329_v40 = vpop.f32.mrb[51].mxu1 }
 0x3ea   :  { %v2208_v61 = vadd.f32 %v2186_v60, %v2058_v14  ;;  %v3296_v54 = vpop.f32.mrb[29].mxu0  ;;  %v3738_v60 = vld [vmem:[%s4749_s9 + $0x10] sm:$0xff]   ;;  %v3739_v40 = vld [vmem:[%s4749_s9 + $0x18] sm:$0xff]  }
 0x3eb   :  { %v2189_v41 = vpop.f32.mrb[30].mxu0  ;;  %v3741_v54 = vld [vmem:[%s4749_s9 + $0x28] sm:$0xff]  }
 0x3ec   :  { %v2209_v62 = vadd.f32 %v2189_v41, %v2061_v19  ;;  %v3297_v63 = vpop.f32.mrb[31].mxu0  ;;  %v2343_v0 = vadd.f32 %v2321_v52, %v2208_v61  ;;  %v3740_v61 = vld [vmem:[%s4749_s9 + $0x20] sm:$0xff]  }
 0x3ee   :  { %v2337_v1 = vpop.f32.mrb[52].mxu1  ;;  %v2344_v3 = vadd.f32 %v2324_v56, %v2209_v62 }
 0x3ef   :  { %v3332_v4 = vpop.f32.mrb[53].mxu1 }
 0x3f0   :  { %v2340_v5 = vpop.f32.mrb[54].mxu1 }
 0x3f1   :  { %v2194_v11 = vpop.f32.mrb[32].mxu0  ;;  %v3333_v12 = vpop.f32.mrb[55].mxu1 }
 0x3f2   :  { %v2210_v9 = vadd.f32 %v2194_v11, %v2066_v8  ;;  %v3300_v10 = vpop.f32.mrb[33].mxu0 }
 0x3f3   :  { %v2197_v13 = vpop.f32.mrb[34].mxu0 }
 0x3f4   :  { %v2211_v16 = vadd.f32 %v2197_v13, %v2069_v32  ;;  %v3301_v20 = vpop.f32.mrb[35].mxu0  ;;  %v2345_v21 = vadd.f32 %v2329_v58, %v2210_v9 }
 0x3f6   :  { %v2346_v22 = vadd.f32 %v2332_v26, %v2211_v16  ;;  %v3737_v26 = vld [vmem:[%s4749_s9 + $0x8] sm:$0xff]  }
 0x3f9   :  { %v2202_v23 = vpop.f32.mrb[36].mxu0 }
 0x3fa   :  { %v2212_v24 = vadd.f32 %v2202_v23, %v2074_v49  ;;  %v3304_v25 = vpop.f32.mrb[37].mxu0 }
 0x3fb   :  { %v2205_v27 = vpop.f32.mrb[38].mxu0 }
 0x3fc   :  { %v3305_v28 = vpop.f32.mrb[39].mxu0  ;;  %v2347_v7 = vadd.f32 %v2337_v1, %v2212_v24  ;;  %v3743_v1 = vld [vmem:[%s4749_s9 + $0x38] sm:$0xff]  }
 0x409   :  { %v2447_v29 = vpop.f32.mrb[40].mxu0 }
 0x40a   :  { %v2469_v6 = vadd.f32 %v2447_v29, %v2343_v0  ;;  %v3352_v34 = vpop.f32.mrb[41].mxu0  ;;  %v3742_v0 = vld [vmem:[%s4749_s9 + $0x30] sm:$0xff]  }
 0x40b   :  { %v2450_v38 = vpop.f32.mrb[42].mxu0 }
 0x40c   :  { %v2481_v30 = vadd.f32 %v3121_v37, %v2469_v6  ;;  %v2470_v14 = vadd.f32 %v2450_v38, %v2344_v3  ;;  %v3353_v17 = vpop.f32.mrb[43].mxu0  ;;  %v3125_v3 = vld [vmem:[%s4748_s8] ss:$0 sm:$0xff]  ;;  %s3744_s8 = scalar_lea.vmem %s2810_s20, 32 }
 0x40d   :  { %p3745_p0 = scmp.ne.s32.totalorder %s2810_s20, %s3744_s8  ;;  %p3750_p2 = scmp.lt.s32.totalorder %s3744_s8, %s3744_s8 }
 0x40e   :  { %v2482_v39 = vadd.f32 %v3121_v37, %v2470_v14  ;;  %v2486_v19 = vmax.f32 %v2481_v30, 0.0 }
 0x40f   :  { %p3751_p3 = por %p3750_p2, %p3749_p1 }
 0x410   :  { %v2487_v42 = vmax.f32 %v2482_v39, 0.0 }
 0x411   :  { %v2455_v43 = vpop.f32.mrb[44].mxu0  ;;  %p3752_p4 = pnand %p3751_p3, %p3745_p0 }
 0x412   :  { %v3416_v46 = vpack.c.bf16 %v2487_v42, %v2486_v19  ;;  %v2471_v44 = vadd.f32 %v2455_v43, %v2345_v21  ;;  %v3356_v47 = vpop.f32.mrb[45].mxu0 }
 0x413   :  { %v2458_v31 = vpop.f32.mrb[46].mxu0 }
 0x414   :  { %v2483_v8 = vadd.f32 %v3121_v37, %v2471_v44  ;;  %v2472_v2 = vadd.f32 %v2458_v31, %v2346_v22  ;;  %v3357_v18 = vpop.f32.mrb[47].mxu0  ;;  %3417 = vmatpush3.bf16.msra.mxu1 %v3416_v46 }
 0x415   :  { %3418 = vmatprep.subr.bf16.mxu1 %v3771_v15 }
 0x416   :  { %v2484_v32 = vadd.f32 %v3121_v37, %v2472_v2  ;;  %v2488_v49 = vmax.f32 %v2483_v8, 0.0 }
 0x418   :  { %v2489_v50 = vmax.f32 %v2484_v32, 0.0 }
 0x419   :  { %v2463_v51 = vpop.f32.mrb[48].mxu0 }
 0x41a   :  { %v3419_v52 = vpack.c.bf16 %v2489_v50, %v2488_v49  ;;  %v2473_v53 = vadd.f32 %v2463_v51, %v2347_v7  ;;  %v3360_v55 = vpop.f32.mrb[49].mxu0 }
 0x41b   :  { %v2466_v56 = vpop.f32.mrb[50].mxu0 }
 0x41c   :  { %v2485_v57 = vadd.f32 %v3121_v37, %v2473_v53  ;;  %v3361_v58 = vpop.f32.mrb[51].mxu0  ;;  %3420 = vmatpush3.bf16.msra.mxu1 %v3419_v52 }
 0x41d   :  { %3370 = vmatprep.subr.mxu1 %v3769_v48 }
 0x41e   :  { %v2490_v15 = vmax.f32 %v2485_v57, 0.0 }
 0x420   :  { %3371 = vmatpush3.msk.msra.mxu1 %vm2503_vm10, %v2490_v15 }
 0x421   :  { %3373 = vmatmul.mubr.msk.f32.vlgmr.msra.gmra.mrb[56].mxu1 %vm2499_vm11, %v3122_v59  ;;  %3395 = vmatprep.subr.bf16.mxu1 %v3769_v48 }
 0x422   :  { %3411 = vmatprep.mubr.msk.bf16.mxu1 %vm3770_vm7, %v3769_v48  ;;  %3396 = vmatpush3.bf16.msra.mxu1 %v3736_v36 }
 0x423   :  { %3397 = vmatprep.subr.bf16.mxu1 %v3769_v48 }
 0x426   :  { %3398 = vmatpush3.bf16.msra.mxu1 %v3737_v26 }
 0x427   :  { %3399 = vmatprep.subr.bf16.mxu1 %v3769_v48 }
 0x42a   :  { %3400 = vmatpush3.bf16.msra.mxu1 %v3738_v60 }
 0x42b   :  { %3401 = vmatprep.subr.bf16.mxu1 %v3769_v48 }
 0x42e   :  { %3402 = vmatpush3.bf16.msra.mxu1 %v3739_v40 }
 0x42f   :  { %3403 = vmatprep.subr.bf16.mxu1 %v3769_v48 }
 0x432   :  { %3404 = vmatpush3.bf16.msra.mxu1 %v3740_v61 }
 0x433   :  { %3405 = vmatprep.subr.bf16.mxu1 %v3769_v48 }
 0x436   :  { %3406 = vmatpush3.bf16.msra.mxu1 %v3741_v54 }
 0x437   :  { %3407 = vmatprep.subr.bf16.mxu1 %v3769_v48 }
 0x43a   :  { %3408 = vmatpush3.bf16.msra.mxu1 %v3742_v0 }
 0x43b   :  { %3409 = vmatprep.subr.bf16.mxu1 %v3769_v48  ;;  %v3134_v48 = vld [vmem:[%s4750_s10] ss:$0 sm:$0xff] }
 0x43e   :  { %3410 = vmatpush3.bf16.msra.mxu1 %v3743_v1 }
 0x4f4   :  { %v2573_v41 = vpop.f32.mrb[56].mxu1 }
 0x4f5   :  { %v2577_v62 = vpack.c.bf16 %v2573_v41, %v2573_v41  ;;  %v3374_v63 = vpop.f32.mrb[57].mxu1 }
 0x4f7   :  { %3392 = vmatmul.mubr.bf16.vlgmr.msra.gmra.mrb[52].mxu0 %v2577_v62 }
 0x5ca   :  { %v2683_v4 = vpop.f32.mrb[52].mxu0 }
 0x5cb   :  { %v2684_v5 = vadd.f32 %v3125_v3, %v2683_v4  ;;  %v3393_v11 = vpop.f32.mrb[53].mxu0 }
 0x5cc   :  { %v2686_v12 = vpop.f32.mrb[54].mxu0 }
 0x5cd   :  { %v2689_v9 = vmax.f32 %v2684_v5, 0.0  ;;  %v3394_v10 = vpop.f32.mrb[55].mxu0 }
 0x5cf   :  { %v2690_v13 = vpack.c.bf16 %v2689_v9, %v2689_v9 }
 0x5d1   :  { %3412 = vmatmul.mubr.bf16.vlgmr.msra.gmra.mrb[60].mxu1 %v2690_v13 }
 0x6a4   :  { %v2796_v16 = vpop.f32.mrb[60].mxu1 }
 0x6a5   :  { %v2797_v20 = vadd.f32 %v3134_v48, %v2796_v16  ;;  %v3413_v21 = vpop.f32.mrb[61].mxu1 }
 0x6a6   :  { %v2799_v22 = vpop.f32.mrb[62].mxu1 }
 0x6a7   :  { %2802 = vst [vmem:[#allocation2] sm:$0x3] %v2797_v20  ;;  %v3414_v23 = vpop.f32.mrb[63].mxu1 }
 0x6a8   :  { %3755 = shalt.err (!%p3752_p4)
}
 0x6a9   :  { %s3756_s10 = scalar_lea.hbm %s4751_s11, 32 }
 0x6aa   :  { %p3757_p5 = scmp.ne.s32.totalorder %s4751_s11, %s3756_s10  ;;  %p3760_p6 = scmp.lt.u32.totalorder %s3756_s10, %s4751_s11 }
 0x6ac   :  { %p3762_p7 = pnand %p3760_p6, %p3757_p5 }
 0x6ae   :  { %3765 = shalt.err (!%p3762_p7)
}
 0x6af   :  { %2812 = dma.vmem_to_hbm [thread:$0]  %s2810_s20, 32, %s4751_s11, [#allocation3]  }
 0x6b0   :  { %3766 = dma.done.wait [#allocation3], 32  }
 0x6b1   :  { %3767 = vsyncadd [#allocation3], 4294967264 }
 0x6b2   :  { %2816 = vsyncpa [#allocation3], 1 }

</bundles_post_ra>
